<compile_context>
chip_gen: v7x
topology: tpu7x:2x2x1
jax: 0.10.0
libtpu: 0.0.40
codegen_flags: <defaults>
</compile_context>

<pallas_src>
import functools

import jax
import jax.numpy as jnp
from jax.experimental import pallas as pl
from jax.experimental.pallas import tpu as pltpu


# ------------------------------ Pallas kernel ------------------------------ #

def fused_mpnn_kernel(x_ref, w_in_ref, b_in_ref,
                      s_all_ref, s_dst_t_ref, pool_ref,
                      w1_ref, eb1_ref, w2_ref, b2_ref,
                      w3_ref, b3_ref, w4_ref, b4_ref,
                      out_ref, *, num_layers, num_edges, half):
    """Whole forward pass: lin_in -> L x (message/aggregate/update + residual)
    -> global mean pool.  One grid step; layers fully unrolled."""
    f32 = jnp.float32
    bf16 = jnp.bfloat16

    # --- lin_in: h0 = x @ W_in + b_in (f32, exact; padded lanes stay 0)
    h = (jnp.dot(x_ref[...], w_in_ref[...], preferred_element_type=f32)
         + b_in_ref[...])                                           # (N, D)

    s_all = s_all_ref[...]      # (2E, N) bf16; rows [0:E)=dst sel, [E:2E)=src sel
    s_dst_t = s_dst_t_ref[...]  # (N, E)  bf16; pre-transposed scatter selector

    for l in range(num_layers):  # fully unrolled; all weights resident in VMEM
        # --- gather both endpoints with ONE fused matmul, then a free row split
        g = jnp.dot(s_all, h.astype(bf16), preferred_element_type=f32)   # (2E, D)
        h_dst = g[:num_edges]
        h_src = g[num_edges:]

        # --- message MLP psi (BN folded): pack [h_dst | h_src] into 128 lanes
        #     via an XLU lane roll (lanes [half:) of h_dst/h_src are exactly 0).
        hh = h_dst + pltpu.roll(h_src, half, 1)                          # (E, D)
        z = jnp.maximum(
            jnp.dot(hh.astype(bf16), w1_ref[l], preferred_element_type=f32)
            + eb1_ref[l], 0.0)
        msg = jnp.maximum(
            jnp.dot(z.astype(bf16), w2_ref[l], preferred_element_type=f32)
            + b2_ref[l], 0.0)                                            # (E, D)

        # --- aggregate: scatter-add onto destination nodes (pre-transposed sel.)
        aggr = jnp.dot(s_dst_t, msg.astype(bf16),
                       preferred_element_type=f32)                       # (N, D)

        # --- update MLP phi (BN folded): pack [h | aggr] with the same roll
        ha = h + pltpu.roll(aggr, half, 1)
        u = jnp.maximum(
            jnp.dot(ha.astype(bf16), w3_ref[l], preferred_element_type=f32)
            + b3_ref[l], 0.0)
        upd = jnp.maximum(
            jnp.dot(u.astype(bf16), w4_ref[l], preferred_element_type=f32)
            + b4_ref[l], 0.0)                                            # (N, D)

        # --- residual connection: h = h + conv(h, ...)
        h = h + upd

    # --- fused global mean pool (matmul with 1/count weights)
    out_ref[...] = jnp.dot(pool_ref[...], h.astype(bf16),
                           preferred_element_type=f32)


def mpnn_forward_fused(kp, x_feat, s_src, s_dst, pool_mat):
    """lin_in + num_layers MPNN layers + mean pool in one pallas_call."""
    N = x_feat.shape[0]
    E = s_src.shape[0]
    B = pool_mat.shape[0]
    L = kp["w1"].shape[0]
    D = kp["w_in"].shape[1]          # padded feature dim (128)
    in_dim = x_feat.shape[1]
    half = D // 2

    # MXU-side operands in bf16 (one-hot / 1-over-count values are exact).
    s_all = jnp.concatenate([s_dst, s_src], axis=0).astype(jnp.bfloat16)  # (2E, N)
    s_dst_t = jnp.transpose(s_dst).astype(jnp.bfloat16)                   # (N, E)
    pool_bf = pool_mat.astype(jnp.bfloat16)                               # (B, N)

    args = [x_feat, kp["w_in"], kp["b_in"],
            s_all, s_dst_t, pool_bf,
            kp["w1"], kp["eb1"], kp["w2"], kp["b2"],
            kp["w3"], kp["b3"], kp["w4"], kp["b4"]]

    def full_spec(a):                # whole array as one VMEM block, DMA'd once
        shape = tuple(int(s) for s in a.shape)
        return pl.BlockSpec(shape, lambda i, _nd=len(shape): (0,) * _nd)

    # advisory cost estimate for XLA's scheduler
    per_layer = (2 * (2 * E) * N * D        # fused gather
                 + 2 * E * D * D            # message linear 1 (roll-packed K=D)
                 + 2 * E * D * D            # message linear 2
                 + 2 * N * E * D            # scatter-add
                 + 2 * N * D * D            # update linear 1 (roll-packed K=D)
                 + 2 * N * D * D)           # update linear 2
    flops = L * per_layer + 2 * N * in_dim * D + 2 * B * N * D
    bytes_accessed = sum(int(a.size) * a.dtype.itemsize for a in args) + B * D * 4

    kernel = functools.partial(fused_mpnn_kernel,
                               num_layers=int(L), num_edges=int(E), half=int(half))

    return pl.pallas_call(
        kernel,
        out_shape=jax.ShapeDtypeStruct((B, D), jnp.float32),
        grid_spec=pltpu.PrefetchScalarGridSpec(
            num_scalar_prefetch=0,
            grid=(1,),                       # single step: layers unrolled in-kernel
            in_specs=[full_spec(a) for a in args],
            out_specs=pl.BlockSpec((B, D), lambda i: (0, 0)),
        ),
        compiler_params=pltpu.CompilerParams(
            dimension_semantics=("arbitrary",),
        ),
        cost_estimate=pl.CostEstimate(flops=int(flops), transcendentals=0,
                                      bytes_accessed=int(bytes_accessed)),
    )(*args)


# --------------------------- parameter utilities ---------------------------- #

def init_linear(key, fan_in, fan_out):
    kw, kb = jax.random.split(key)
    bound = 1.0 / jnp.sqrt(fan_in)
    w = jax.random.uniform(kw, (fan_in, fan_out), jnp.float32, -bound, bound)
    b = jax.random.uniform(kb, (fan_out,), jnp.float32, -bound, bound)
    return w, b


def init_bn(key, dim):
    k1, k2, k3, k4 = jax.random.split(key, 4)
    gamma = jax.random.uniform(k1, (dim,), jnp.float32, 0.5, 1.5)
    beta = jax.random.uniform(k2, (dim,), jnp.float32, -0.1, 0.1)
    r_mean = jax.random.uniform(k3, (dim,), jnp.float32, -0.1, 0.1)
    r_var = jax.random.uniform(k4, (dim,), jnp.float32, 0.5, 1.5)
    return gamma, beta, r_mean, r_var


def fold_bn(w, b, bn, eps=1e-5):
    # bn(x @ w + b) = x @ (w * s) + (b * s + t), eval-mode running stats
    gamma, beta, r_mean, r_var = bn
    s = gamma / jnp.sqrt(r_var + eps)
    t = beta - r_mean * s
    return w * s[None, :], b * s + t


def init_mpnn_layer_params(key, emb_dim, edge_dim):
    ks = jax.random.split(key, 8)
    w1, b1 = init_linear(ks[0], 2 * emb_dim + edge_dim, emb_dim)
    bn1 = init_bn(ks[1], emb_dim)
    w2, b2 = init_linear(ks[2], emb_dim, emb_dim)
    bn2 = init_bn(ks[3], emb_dim)
    w3, b3 = init_linear(ks[4], 2 * emb_dim, emb_dim)
    bn3 = init_bn(ks[5], emb_dim)
    w4, b4 = init_linear(ks[6], emb_dim, emb_dim)
    bn4 = init_bn(ks[7], emb_dim)

    w1f, b1f = fold_bn(w1, b1, bn1)
    w2f, b2f = fold_bn(w2, b2, bn2)
    w3f, b3f = fold_bn(w3, b3, bn3)
    w4f, b4f = fold_bn(w4, b4, bn4)

    return {
        # message MLP: input ordering is cat([h_i(dst), h_j(src), edge_attr])
        "w1d": w1f[:emb_dim], "w1s": w1f[emb_dim:2 * emb_dim],
        "w1e": w1f[2 * emb_dim:], "b1": b1f,
        "w2": w2f, "b2": b2f,
        # update MLP: input ordering is cat([h, aggr])
        "w3h": w3f[:emb_dim], "w3a": w3f[emb_dim:], "b3": b3f,
        "w4": w4f, "b4": b4f,
    }


def pack_kernel_params(raw, ea_feat, d_pad):
    """Pad feature dim to d_pad, stack per-layer weights with a leading layer
    axis, repack the first linears of both MLPs for the in-kernel lane-roll
    packing (rows [0:emb) <- first operand, rows [half:half+emb) <- rolled
    second operand), precompute the layer-invariant edge bias term
    eb1 = edge_attr @ w1e + b1 (BN folded), and cast MXU weight operands to
    bf16.  Biases / eb1 stay f32 (VPU-side adds)."""
    emb = raw["w_in"].shape[1]
    half = d_pad // 2
    assert emb <= half, "lane-roll packing requires emb_dim <= d_pad // 2"

    def pad_vec(b):
        return jnp.pad(b, (0, d_pad - b.shape[0]))

    w_in = jnp.pad(raw["w_in"], ((0, 0), (0, d_pad - emb)))   # (in_dim, Dp) f32
    b_in = pad_vec(raw["b_in"]).reshape(1, -1)                # (1, Dp) f32

    W1, EB1, W2, B2, W3, B3, W4, B4 = [], [], [], [], [], [], [], []
    for p in raw["layers"]:
        # roll-packed message linear 1: lanes [0:emb)=h_dst, [half:half+emb)=h_src
        w1 = jnp.zeros((d_pad, d_pad), jnp.float32)
        w1 = w1.at[:emb, :emb].set(p["w1d"])
        w1 = w1.at[half:half + emb, :emb].set(p["w1s"])
        W1.append(w1)
        # layer-invariant edge term (edge_attr @ W1_edge + b1, BN folded)
        eb1 = ea_feat @ p["w1e"] + p["b1"]                     # (E, emb)
        EB1.append(jnp.pad(eb1, ((0, 0), (0, d_pad - emb))))
        W2.append(jnp.zeros((d_pad, d_pad), jnp.float32).at[:emb, :emb].set(p["w2"]))
        B2.append(pad_vec(p["b2"]).reshape(1, -1))
        # roll-packed update linear 1: lanes [0:emb)=h, [half:half+emb)=aggr
        w3 = jnp.zeros((d_pad, d_pad), jnp.float32)
        w3 = w3.at[:emb, :emb].set(p["w3h"])
        w3 = w3.at[half:half + emb, :emb].set(p["w3a"])
        W3.append(w3)
        B3.append(pad_vec(p["b3"]).reshape(1, -1))
        W4.append(jnp.zeros((d_pad, d_pad), jnp.float32).at[:emb, :emb].set(p["w4"]))
        B4.append(pad_vec(p["b4"]).reshape(1, -1))

    bf16 = jnp.bfloat16
    return {
        "w_in": w_in, "b_in": b_in,
        "w1": jnp.stack(W1).astype(bf16), "eb1": jnp.stack(EB1),
        "w2": jnp.stack(W2).astype(bf16), "b2": jnp.stack(B2),
        "w3": jnp.stack(W3).astype(bf16), "b3": jnp.stack(B3),
        "w4": jnp.stack(W4).astype(bf16), "b4": jnp.stack(B4),
    }


def unpackbits(x_uint8, nbits):
    # mimics F_unpackbits(x, -1).float(): expand each uint8 into 8 bits (MSB
    # first), keep the first `nbits` features.  Plain-JAX glue, not hot path.
    shifts = jnp.arange(7, -1, -1, dtype=jnp.uint8)
    bits = (x_uint8[..., :, None] >> shifts) & jnp.uint8(1)
    bits = bits.reshape(*x_uint8.shape[:-1], x_uint8.shape[-1] * 8)
    return bits[..., :nbits].astype(jnp.float32)


# ------------------------------- reference ---------------------------------- #

def reference_forward(raw, x_feat, ea_feat, s_src, s_dst, pool_mat):
    # plain-JAX (unpadded, f32) reference for correctness checking
    h = x_feat @ raw["w_in"] + raw["b_in"]
    for p in raw["layers"]:
        h_src = s_src @ h
        h_dst = s_dst @ h
        z = jnp.maximum(h_dst @ p["w1d"] + h_src @ p["w1s"]
                        + ea_feat @ p["w1e"] + p["b1"], 0.0)
        msg = jnp.maximum(z @ p["w2"] + p["b2"], 0.0)
        aggr = s_dst.T @ msg
        u = jnp.maximum(h @ p["w3h"] + aggr @ p["w3a"] + p["b3"], 0.0)
        upd = jnp.maximum(u @ p["w4"] + p["b4"], 0.0)
        h = h + upd
    return pool_mat @ h


# ---------------------------------- main ------------------------------------ #

if __name__ == "__main__":
    N, E, B = 16, 32, 2              # nodes, edges, graphs
    IN_DIM, EMB, EDGE_DIM = 11, 64, 4
    NUM_LAYERS = 4
    D_PAD = 128                      # lane-/MXU-friendly padded feature dim

    key = jax.random.PRNGKey(0)
    k_x, k_ea, k_src, k_dst, k_par = jax.random.split(key, 5)

    # synthetic bit-packed inputs (the model applies F_unpackbits to x / edge_attr)
    x_packed = jax.random.randint(k_x, (N, 2), 0, 256).astype(jnp.uint8)
    ea_packed = jax.random.randint(k_ea, (E, 1), 0, 256).astype(jnp.uint8)
    x_feat = unpackbits(x_packed, IN_DIM)            # (N, 11) float32
    ea_feat = unpackbits(ea_packed, EDGE_DIM)        # (E, 4)  float32

    # edge_index in PyG convention: row 0 = source j, row 1 = destination i
    src = jax.random.randint(k_src, (E,), 0, N)
    dst = jax.random.randint(k_dst, (E,), 0, N)
    s_src = jax.nn.one_hot(src, N, dtype=jnp.float32)   # (E, N)
    s_dst = jax.nn.one_hot(dst, N, dtype=jnp.float32)   # (E, N)

    # batch assignment: first half of nodes -> graph 0, second half -> graph 1
    batch = jnp.concatenate([jnp.zeros(N // 2, jnp.int32),
                             jnp.ones(N - N // 2, jnp.int32)])
    one_hot_b = jax.nn.one_hot(batch, B, dtype=jnp.float32).T     # (B, N)
    counts = jnp.sum(one_hot_b, axis=1, keepdims=True)
    pool_mat = one_hot_b / counts                                  # mean-pool weights

    # parameters (BN folded, eval mode)
    k_in, *k_layers = jax.random.split(k_par, NUM_LAYERS + 1)
    w_in, b_in = init_linear(k_in, IN_DIM, EMB)
    raw_params = {
        "w_in": w_in,
        "b_in": b_in,
        "layers": [init_mpnn_layer_params(k, EMB, EDGE_DIM) for k in k_layers],
    }
    kernel_params = pack_kernel_params(raw_params, ea_feat, D_PAD)

    out_padded = mpnn_forward_fused(kernel_params, x_feat, s_src, s_dst, pool_mat)
    out_padded = jax.block_until_ready(out_padded)
    out = out_padded[:, :EMB]                          # drop zero-padded channels

    ref = reference_forward(raw_params, x_feat, ea_feat, s_src, s_dst, pool_mat)
    assert out.shape == (B, EMB)
    # bf16 MXU operands (intentional trade-off) -> relaxed tolerance vs f32 ref
    assert jnp.allclose(out, ref, rtol=4e-2, atol=4e-2), "mismatch vs JAX reference"
    # padded channels must be exactly zero (zero weights/biases, ReLU(0)=0)
    assert jnp.allclose(out_padded[:, EMB:], 0.0), "padded channels not zero"

    print("KERNEL_OK")
</pallas_src>

<mosaic_0001>
module attributes {stable_mosaic.version = 11 : i64} {
  func.func @fused_mpnn_kernel(%arg0: i32, %arg1: memref<16x11xf32, #tpu.memory_space<vmem>>, %arg2: memref<11x128xf32, #tpu.memory_space<vmem>>, %arg3: memref<1x128xf32, #tpu.memory_space<vmem>>, %arg4: memref<64x16xbf16, #tpu.memory_space<vmem>>, %arg5: memref<16x32xbf16, #tpu.memory_space<vmem>>, %arg6: memref<2x16xbf16, #tpu.memory_space<vmem>>, %arg7: memref<4x128x128xbf16, #tpu.memory_space<vmem>>, %arg8: memref<4x32x128xf32, #tpu.memory_space<vmem>>, %arg9: memref<4x128x128xbf16, #tpu.memory_space<vmem>>, %arg10: memref<4x1x128xf32, #tpu.memory_space<vmem>>, %arg11: memref<4x128x128xbf16, #tpu.memory_space<vmem>>, %arg12: memref<4x1x128xf32, #tpu.memory_space<vmem>>, %arg13: memref<4x128x128xbf16, #tpu.memory_space<vmem>>, %arg14: memref<4x1x128xf32, #tpu.memory_space<vmem>>, %arg15: memref<2x128xf32, #tpu.memory_space<vmem>>) attributes {dimension_semantics = [#tpu.dimension_semantics<arbitrary>], iteration_bounds = array<i64: 1>, scalar_prefetch = 0 : i64, scratch_operands = 0 : i64, tpu.core_type = #tpu.core_type<tc>, window_params = [{pipeline_mode = #tpu.pipeline_mode<synchronous>, transform_indices = @transform_0, window_bounds = array<i64: 16, 11>}, {pipeline_mode = #tpu.pipeline_mode<synchronous>, transform_indices = @transform_1, window_bounds = array<i64: 11, 128>}, {pipeline_mode = #tpu.pipeline_mode<synchronous>, transform_indices = @transform_2, window_bounds = array<i64: 1, 128>}, {pipeline_mode = #tpu.pipeline_mode<synchronous>, transform_indices = @transform_3, window_bounds = array<i64: 64, 16>}, {pipeline_mode = #tpu.pipeline_mode<synchronous>, transform_indices = @transform_4, window_bounds = array<i64: 16, 32>}, {pipeline_mode = #tpu.pipeline_mode<synchronous>, transform_indices = @transform_5, window_bounds = array<i64: 2, 16>}, {pipeline_mode = #tpu.pipeline_mode<synchronous>, transform_indices = @transform_6, window_bounds = array<i64: 4, 128, 128>}, {pipeline_mode = #tpu.pipeline_mode<synchronous>, transform_indices = @transform_7, window_bounds = array<i64: 4, 32, 128>}, {pipeline_mode = #tpu.pipeline_mode<synchronous>, transform_indices = @transform_8, window_bounds = array<i64: 4, 128, 128>}, {pipeline_mode = #tpu.pipeline_mode<synchronous>, transform_indices = @transform_9, window_bounds = array<i64: 4, 1, 128>}, {pipeline_mode = #tpu.pipeline_mode<synchronous>, transform_indices = @transform_10, window_bounds = array<i64: 4, 128, 128>}, {pipeline_mode = #tpu.pipeline_mode<synchronous>, transform_indices = @transform_11, window_bounds = array<i64: 4, 1, 128>}, {pipeline_mode = #tpu.pipeline_mode<synchronous>, transform_indices = @transform_12, window_bounds = array<i64: 4, 128, 128>}, {pipeline_mode = #tpu.pipeline_mode<synchronous>, transform_indices = @transform_13, window_bounds = array<i64: 4, 1, 128>}, {pipeline_mode = #tpu.pipeline_mode<synchronous>, transform_indices = @transform_14, window_bounds = array<i64: 2, 128>}]} {
    %c0 = arith.constant 0 : index
    %c0_0 = arith.constant 0 : index
    %0 = vector.load %arg1[%c0, %c0_0] : memref<16x11xf32, #tpu.memory_space<vmem>>, vector<16x11xf32>
    %c0_1 = arith.constant 0 : index
    %c0_2 = arith.constant 0 : index
    %1 = vector.load %arg2[%c0_1, %c0_2] : memref<11x128xf32, #tpu.memory_space<vmem>>, vector<11x128xf32>
    %cst = arith.constant dense<0.000000e+00> : vector<16x128xf32>
    %2 = tpu.matmul %0, %1, %cst {dimension_numbers = #tpu.dot_dimension_numbers<[1], [0], [0], [1], [0, 0, 1, 1], [], []>} : vector<16x11xf32>, vector<11x128xf32>, vector<16x128xf32> -> vector<16x128xf32>
    %c0_3 = arith.constant 0 : index
    %c0_4 = arith.constant 0 : index
    %3 = vector.load %arg3[%c0_3, %c0_4] : memref<1x128xf32, #tpu.memory_space<vmem>>, vector<1x128xf32>
    %4 = vector.broadcast %3 : vector<1x128xf32> to vector<16x128xf32>
    %5 = arith.addf %2, %4 : vector<16x128xf32>
    %c0_5 = arith.constant 0 : index
    %c0_6 = arith.constant 0 : index
    %6 = vector.load %arg4[%c0_5, %c0_6] : memref<64x16xbf16, #tpu.memory_space<vmem>>, vector<64x16xbf16>
    %c0_7 = arith.constant 0 : index
    %c0_8 = arith.constant 0 : index
    %7 = vector.load %arg5[%c0_7, %c0_8] : memref<16x32xbf16, #tpu.memory_space<vmem>>, vector<16x32xbf16>
    %8 = arith.truncf %5 : vector<16x128xf32> to vector<16x128xbf16>
    %cst_9 = arith.constant dense<0.000000e+00> : vector<64x128xf32>
    %9 = tpu.matmul %6, %8, %cst_9 {dimension_numbers = #tpu.dot_dimension_numbers<[1], [0], [0], [1], [0, 0, 1, 1], [], []>} : vector<64x16xbf16>, vector<16x128xbf16>, vector<64x128xf32> -> vector<64x128xf32>
    %10 = vector.extract_strided_slice %9 {offsets = [0, 0], sizes = [32, 128], strides = [1, 1]} : vector<64x128xf32> to vector<32x128xf32>
    %11 = vector.extract_strided_slice %9 {offsets = [32, 0], sizes = [32, 128], strides = [1, 1]} : vector<64x128xf32> to vector<32x128xf32>
    %c64_i32 = arith.constant 64 : i32
    %12 = tpu.dynamic_rotate %11 by %c64_i32 dim 1 : vector<32x128xf32>, i32 -> vector<32x128xf32>
    %13 = arith.addf %10, %12 : vector<32x128xf32>
    %14 = arith.truncf %13 : vector<32x128xf32> to vector<32x128xbf16>
    %c0_10 = arith.constant 0 : index
    %c0_11 = arith.constant 0 : index
    %c0_12 = arith.constant 0 : index
    %15 = vector.load %arg7[%c0_10, %c0_11, %c0_12] : memref<4x128x128xbf16, #tpu.memory_space<vmem>>, vector<1x128x128xbf16>
    %16 = vector.shape_cast %15 : vector<1x128x128xbf16> to vector<128x128xbf16>
    %cst_13 = arith.constant dense<0.000000e+00> : vector<32x128xf32>
    %17 = tpu.matmul %14, %16, %cst_13 {dimension_numbers = #tpu.dot_dimension_numbers<[1], [0], [0], [1], [0, 0, 1, 1], [], []>} : vector<32x128xbf16>, vector<128x128xbf16>, vector<32x128xf32> -> vector<32x128xf32>
    %c0_14 = arith.constant 0 : index
    %c0_15 = arith.constant 0 : index
    %c0_16 = arith.constant 0 : index
    %18 = vector.load %arg8[%c0_14, %c0_15, %c0_16] : memref<4x32x128xf32, #tpu.memory_space<vmem>>, vector<1x32x128xf32>
    %19 = vector.shape_cast %18 : vector<1x32x128xf32> to vector<32x128xf32>
    %20 = arith.addf %17, %19 : vector<32x128xf32>
    %cst_17 = arith.constant 0.000000e+00 : f32
    %21 = vector.broadcast %cst_17 : f32 to vector<32x128xf32>
    %22 = arith.maximumf %20, %21 : vector<32x128xf32>
    %23 = arith.truncf %22 : vector<32x128xf32> to vector<32x128xbf16>
    %c0_18 = arith.constant 0 : index
    %c0_19 = arith.constant 0 : index
    %c0_20 = arith.constant 0 : index
    %24 = vector.load %arg9[%c0_18, %c0_19, %c0_20] : memref<4x128x128xbf16, #tpu.memory_space<vmem>>, vector<1x128x128xbf16>
    %25 = vector.shape_cast %24 : vector<1x128x128xbf16> to vector<128x128xbf16>
    %cst_21 = arith.constant dense<0.000000e+00> : vector<32x128xf32>
    %26 = tpu.matmul %23, %25, %cst_21 {dimension_numbers = #tpu.dot_dimension_numbers<[1], [0], [0], [1], [0, 0, 1, 1], [], []>} : vector<32x128xbf16>, vector<128x128xbf16>, vector<32x128xf32> -> vector<32x128xf32>
    %c0_22 = arith.constant 0 : index
    %c0_23 = arith.constant 0 : index
    %c0_24 = arith.constant 0 : index
    %27 = vector.load %arg10[%c0_22, %c0_23, %c0_24] : memref<4x1x128xf32, #tpu.memory_space<vmem>>, vector<1x1x128xf32>
    %28 = vector.shape_cast %27 : vector<1x1x128xf32> to vector<1x128xf32>
    %29 = vector.broadcast %28 : vector<1x128xf32> to vector<32x128xf32>
    %30 = arith.addf %26, %29 : vector<32x128xf32>
    %cst_25 = arith.constant 0.000000e+00 : f32
    %31 = vector.broadcast %cst_25 : f32 to vector<32x128xf32>
    %32 = arith.maximumf %30, %31 : vector<32x128xf32>
    %33 = arith.truncf %32 : vector<32x128xf32> to vector<32x128xbf16>
    %cst_26 = arith.constant dense<0.000000e+00> : vector<16x128xf32>
    %34 = tpu.matmul %7, %33, %cst_26 {dimension_numbers = #tpu.dot_dimension_numbers<[1], [0], [0], [1], [0, 0, 1, 1], [], []>} : vector<16x32xbf16>, vector<32x128xbf16>, vector<16x128xf32> -> vector<16x128xf32>
    %c64_i32_27 = arith.constant 64 : i32
    %35 = tpu.dynamic_rotate %34 by %c64_i32_27 dim 1 : vector<16x128xf32>, i32 -> vector<16x128xf32>
    %36 = arith.addf %5, %35 : vector<16x128xf32>
    %37 = arith.truncf %36 : vector<16x128xf32> to vector<16x128xbf16>
    %c0_28 = arith.constant 0 : index
    %c0_29 = arith.constant 0 : index
    %c0_30 = arith.constant 0 : index
    %38 = vector.load %arg11[%c0_28, %c0_29, %c0_30] : memref<4x128x128xbf16, #tpu.memory_space<vmem>>, vector<1x128x128xbf16>
    %39 = vector.shape_cast %38 : vector<1x128x128xbf16> to vector<128x128xbf16>
    %cst_31 = arith.constant dense<0.000000e+00> : vector<16x128xf32>
    %40 = tpu.matmul %37, %39, %cst_31 {dimension_numbers = #tpu.dot_dimension_numbers<[1], [0], [0], [1], [0, 0, 1, 1], [], []>} : vector<16x128xbf16>, vector<128x128xbf16>, vector<16x128xf32> -> vector<16x128xf32>
    %c0_32 = arith.constant 0 : index
    %c0_33 = arith.constant 0 : index
    %c0_34 = arith.constant 0 : index
    %41 = vector.load %arg12[%c0_32, %c0_33, %c0_34] : memref<4x1x128xf32, #tpu.memory_space<vmem>>, vector<1x1x128xf32>
    %42 = vector.shape_cast %41 : vector<1x1x128xf32> to vector<1x128xf32>
    %43 = vector.broadcast %42 : vector<1x128xf32> to vector<16x128xf32>
    %44 = arith.addf %40, %43 : vector<16x128xf32>
    %cst_35 = arith.constant 0.000000e+00 : f32
    %45 = vector.broadcast %cst_35 : f32 to vector<16x128xf32>
    %46 = arith.maximumf %44, %45 : vector<16x128xf32>
    %47 = arith.truncf %46 : vector<16x128xf32> to vector<16x128xbf16>
    %c0_36 = arith.constant 0 : index
    %c0_37 = arith.constant 0 : index
    %c0_38 = arith.constant 0 : index
    %48 = vector.load %arg13[%c0_36, %c0_37, %c0_38] : memref<4x128x128xbf16, #tpu.memory_space<vmem>>, vector<1x128x128xbf16>
    %49 = vector.shape_cast %48 : vector<1x128x128xbf16> to vector<128x128xbf16>
    %cst_39 = arith.constant dense<0.000000e+00> : vector<16x128xf32>
    %50 = tpu.matmul %47, %49, %cst_39 {dimension_numbers = #tpu.dot_dimension_numbers<[1], [0], [0], [1], [0, 0, 1, 1], [], []>} : vector<16x128xbf16>, vector<128x128xbf16>, vector<16x128xf32> -> vector<16x128xf32>
    %c0_40 = arith.constant 0 : index
    %c0_41 = arith.constant 0 : index
    %c0_42 = arith.constant 0 : index
    %51 = vector.load %arg14[%c0_40, %c0_41, %c0_42] : memref<4x1x128xf32, #tpu.memory_space<vmem>>, vector<1x1x128xf32>
    %52 = vector.shape_cast %51 : vector<1x1x128xf32> to vector<1x128xf32>
    %53 = vector.broadcast %52 : vector<1x128xf32> to vector<16x128xf32>
    %54 = arith.addf %50, %53 : vector<16x128xf32>
    %cst_43 = arith.constant 0.000000e+00 : f32
    %55 = vector.broadcast %cst_43 : f32 to vector<16x128xf32>
    %56 = arith.maximumf %54, %55 : vector<16x128xf32>
    %57 = arith.addf %5, %56 : vector<16x128xf32>
    %58 = arith.truncf %57 : vector<16x128xf32> to vector<16x128xbf16>
    %cst_44 = arith.constant dense<0.000000e+00> : vector<64x128xf32>
    %59 = tpu.matmul %6, %58, %cst_44 {dimension_numbers = #tpu.dot_dimension_numbers<[1], [0], [0], [1], [0, 0, 1, 1], [], []>} : vector<64x16xbf16>, vector<16x128xbf16>, vector<64x128xf32> -> vector<64x128xf32>
    %60 = vector.extract_strided_slice %59 {offsets = [0, 0], sizes = [32, 128], strides = [1, 1]} : vector<64x128xf32> to vector<32x128xf32>
    %61 = vector.extract_strided_slice %59 {offsets = [32, 0], sizes = [32, 128], strides = [1, 1]} : vector<64x128xf32> to vector<32x128xf32>
    %c64_i32_45 = arith.constant 64 : i32
    %62 = tpu.dynamic_rotate %61 by %c64_i32_45 dim 1 : vector<32x128xf32>, i32 -> vector<32x128xf32>
    %63 = arith.addf %60, %62 : vector<32x128xf32>
    %64 = arith.truncf %63 : vector<32x128xf32> to vector<32x128xbf16>
    %c1 = arith.constant 1 : index
    %c0_46 = arith.constant 0 : index
    %c0_47 = arith.constant 0 : index
    %65 = vector.load %arg7[%c1, %c0_46, %c0_47] : memref<4x128x128xbf16, #tpu.memory_space<vmem>>, vector<1x128x128xbf16>
    %66 = vector.shape_cast %65 : vector<1x128x128xbf16> to vector<128x128xbf16>
    %cst_48 = arith.constant dense<0.000000e+00> : vector<32x128xf32>
    %67 = tpu.matmul %64, %66, %cst_48 {dimension_numbers = #tpu.dot_dimension_numbers<[1], [0], [0], [1], [0, 0, 1, 1], [], []>} : vector<32x128xbf16>, vector<128x128xbf16>, vector<32x128xf32> -> vector<32x128xf32>
    %c1_49 = arith.constant 1 : index
    %c0_50 = arith.constant 0 : index
    %c0_51 = arith.constant 0 : index
    %68 = vector.load %arg8[%c1_49, %c0_50, %c0_51] : memref<4x32x128xf32, #tpu.memory_space<vmem>>, vector<1x32x128xf32>
    %69 = vector.shape_cast %68 : vector<1x32x128xf32> to vector<32x128xf32>
    %70 = arith.addf %67, %69 : vector<32x128xf32>
    %cst_52 = arith.constant 0.000000e+00 : f32
    %71 = vector.broadcast %cst_52 : f32 to vector<32x128xf32>
    %72 = arith.maximumf %70, %71 : vector<32x128xf32>
    %73 = arith.truncf %72 : vector<32x128xf32> to vector<32x128xbf16>
    %c1_53 = arith.constant 1 : index
    %c0_54 = arith.constant 0 : index
    %c0_55 = arith.constant 0 : index
    %74 = vector.load %arg9[%c1_53, %c0_54, %c0_55] : memref<4x128x128xbf16, #tpu.memory_space<vmem>>, vector<1x128x128xbf16>
    %75 = vector.shape_cast %74 : vector<1x128x128xbf16> to vector<128x128xbf16>
    %cst_56 = arith.constant dense<0.000000e+00> : vector<32x128xf32>
    %76 = tpu.matmul %73, %75, %cst_56 {dimension_numbers = #tpu.dot_dimension_numbers<[1], [0], [0], [1], [0, 0, 1, 1], [], []>} : vector<32x128xbf16>, vector<128x128xbf16>, vector<32x128xf32> -> vector<32x128xf32>
    %c1_57 = arith.constant 1 : index
    %c0_58 = arith.constant 0 : index
    %c0_59 = arith.constant 0 : index
    %77 = vector.load %arg10[%c1_57, %c0_58, %c0_59] : memref<4x1x128xf32, #tpu.memory_space<vmem>>, vector<1x1x128xf32>
    %78 = vector.shape_cast %77 : vector<1x1x128xf32> to vector<1x128xf32>
    %79 = vector.broadcast %78 : vector<1x128xf32> to vector<32x128xf32>
    %80 = arith.addf %76, %79 : vector<32x128xf32>
    %cst_60 = arith.constant 0.000000e+00 : f32
    %81 = vector.broadcast %cst_60 : f32 to vector<32x128xf32>
    %82 = arith.maximumf %80, %81 : vector<32x128xf32>
    %83 = arith.truncf %82 : vector<32x128xf32> to vector<32x128xbf16>
    %cst_61 = arith.constant dense<0.000000e+00> : vector<16x128xf32>
    %84 = tpu.matmul %7, %83, %cst_61 {dimension_numbers = #tpu.dot_dimension_numbers<[1], [0], [0], [1], [0, 0, 1, 1], [], []>} : vector<16x32xbf16>, vector<32x128xbf16>, vector<16x128xf32> -> vector<16x128xf32>
    %c64_i32_62 = arith.constant 64 : i32
    %85 = tpu.dynamic_rotate %84 by %c64_i32_62 dim 1 : vector<16x128xf32>, i32 -> vector<16x128xf32>
    %86 = arith.addf %57, %85 : vector<16x128xf32>
    %87 = arith.truncf %86 : vector<16x128xf32> to vector<16x128xbf16>
    %c1_63 = arith.constant 1 : index
    %c0_64 = arith.constant 0 : index
    %c0_65 = arith.constant 0 : index
    %88 = vector.load %arg11[%c1_63, %c0_64, %c0_65] : memref<4x128x128xbf16, #tpu.memory_space<vmem>>, vector<1x128x128xbf16>
    %89 = vector.shape_cast %88 : vector<1x128x128xbf16> to vector<128x128xbf16>
    %cst_66 = arith.constant dense<0.000000e+00> : vector<16x128xf32>
    %90 = tpu.matmul %87, %89, %cst_66 {dimension_numbers = #tpu.dot_dimension_numbers<[1], [0], [0], [1], [0, 0, 1, 1], [], []>} : vector<16x128xbf16>, vector<128x128xbf16>, vector<16x128xf32> -> vector<16x128xf32>
    %c1_67 = arith.constant 1 : index
    %c0_68 = arith.constant 0 : index
    %c0_69 = arith.constant 0 : index
    %91 = vector.load %arg12[%c1_67, %c0_68, %c0_69] : memref<4x1x128xf32, #tpu.memory_space<vmem>>, vector<1x1x128xf32>
    %92 = vector.shape_cast %91 : vector<1x1x128xf32> to vector<1x128xf32>
    %93 = vector.broadcast %92 : vector<1x128xf32> to vector<16x128xf32>
    %94 = arith.addf %90, %93 : vector<16x128xf32>
    %cst_70 = arith.constant 0.000000e+00 : f32
    %95 = vector.broadcast %cst_70 : f32 to vector<16x128xf32>
    %96 = arith.maximumf %94, %95 : vector<16x128xf32>
    %97 = arith.truncf %96 : vector<16x128xf32> to vector<16x128xbf16>
    %c1_71 = arith.constant 1 : index
    %c0_72 = arith.constant 0 : index
    %c0_73 = arith.constant 0 : index
    %98 = vector.load %arg13[%c1_71, %c0_72, %c0_73] : memref<4x128x128xbf16, #tpu.memory_space<vmem>>, vector<1x128x128xbf16>
    %99 = vector.shape_cast %98 : vector<1x128x128xbf16> to vector<128x128xbf16>
    %cst_74 = arith.constant dense<0.000000e+00> : vector<16x128xf32>
    %100 = tpu.matmul %97, %99, %cst_74 {dimension_numbers = #tpu.dot_dimension_numbers<[1], [0], [0], [1], [0, 0, 1, 1], [], []>} : vector<16x128xbf16>, vector<128x128xbf16>, vector<16x128xf32> -> vector<16x128xf32>
    %c1_75 = arith.constant 1 : index
    %c0_76 = arith.constant 0 : index
    %c0_77 = arith.constant 0 : index
    %101 = vector.load %arg14[%c1_75, %c0_76, %c0_77] : memref<4x1x128xf32, #tpu.memory_space<vmem>>, vector<1x1x128xf32>
    %102 = vector.shape_cast %101 : vector<1x1x128xf32> to vector<1x128xf32>
    %103 = vector.broadcast %102 : vector<1x128xf32> to vector<16x128xf32>
    %104 = arith.addf %100, %103 : vector<16x128xf32>
    %cst_78 = arith.constant 0.000000e+00 : f32
    %105 = vector.broadcast %cst_78 : f32 to vector<16x128xf32>
    %106 = arith.maximumf %104, %105 : vector<16x128xf32>
    %107 = arith.addf %57, %106 : vector<16x128xf32>
    %108 = arith.truncf %107 : vector<16x128xf32> to vector<16x128xbf16>
    %cst_79 = arith.constant dense<0.000000e+00> : vector<64x128xf32>
    %109 = tpu.matmul %6, %108, %cst_79 {dimension_numbers = #tpu.dot_dimension_numbers<[1], [0], [0], [1], [0, 0, 1, 1], [], []>} : vector<64x16xbf16>, vector<16x128xbf16>, vector<64x128xf32> -> vector<64x128xf32>
    %110 = vector.extract_strided_slice %109 {offsets = [0, 0], sizes = [32, 128], strides = [1, 1]} : vector<64x128xf32> to vector<32x128xf32>
    %111 = vector.extract_strided_slice %109 {offsets = [32, 0], sizes = [32, 128], strides = [1, 1]} : vector<64x128xf32> to vector<32x128xf32>
    %c64_i32_80 = arith.constant 64 : i32
    %112 = tpu.dynamic_rotate %111 by %c64_i32_80 dim 1 : vector<32x128xf32>, i32 -> vector<32x128xf32>
    %113 = arith.addf %110, %112 : vector<32x128xf32>
    %114 = arith.truncf %113 : vector<32x128xf32> to vector<32x128xbf16>
    %c2 = arith.constant 2 : index
    %c0_81 = arith.constant 0 : index
    %c0_82 = arith.constant 0 : index
    %115 = vector.load %arg7[%c2, %c0_81, %c0_82] : memref<4x128x128xbf16, #tpu.memory_space<vmem>>, vector<1x128x128xbf16>
    %116 = vector.shape_cast %115 : vector<1x128x128xbf16> to vector<128x128xbf16>
    %cst_83 = arith.constant dense<0.000000e+00> : vector<32x128xf32>
    %117 = tpu.matmul %114, %116, %cst_83 {dimension_numbers = #tpu.dot_dimension_numbers<[1], [0], [0], [1], [0, 0, 1, 1], [], []>} : vector<32x128xbf16>, vector<128x128xbf16>, vector<32x128xf32> -> vector<32x128xf32>
    %c2_84 = arith.constant 2 : index
    %c0_85 = arith.constant 0 : index
    %c0_86 = arith.constant 0 : index
    %118 = vector.load %arg8[%c2_84, %c0_85, %c0_86] : memref<4x32x128xf32, #tpu.memory_space<vmem>>, vector<1x32x128xf32>
    %119 = vector.shape_cast %118 : vector<1x32x128xf32> to vector<32x128xf32>
    %120 = arith.addf %117, %119 : vector<32x128xf32>
    %cst_87 = arith.constant 0.000000e+00 : f32
    %121 = vector.broadcast %cst_87 : f32 to vector<32x128xf32>
    %122 = arith.maximumf %120, %121 : vector<32x128xf32>
    %123 = arith.truncf %122 : vector<32x128xf32> to vector<32x128xbf16>
    %c2_88 = arith.constant 2 : index
    %c0_89 = arith.constant 0 : index
    %c0_90 = arith.constant 0 : index
    %124 = vector.load %arg9[%c2_88, %c0_89, %c0_90] : memref<4x128x128xbf16, #tpu.memory_space<vmem>>, vector<1x128x128xbf16>
    %125 = vector.shape_cast %124 : vector<1x128x128xbf16> to vector<128x128xbf16>
    %cst_91 = arith.constant dense<0.000000e+00> : vector<32x128xf32>
    %126 = tpu.matmul %123, %125, %cst_91 {dimension_numbers = #tpu.dot_dimension_numbers<[1], [0], [0], [1], [0, 0, 1, 1], [], []>} : vector<32x128xbf16>, vector<128x128xbf16>, vector<32x128xf32> -> vector<32x128xf32>
    %c2_92 = arith.constant 2 : index
    %c0_93 = arith.constant 0 : index
    %c0_94 = arith.constant 0 : index
    %127 = vector.load %arg10[%c2_92, %c0_93, %c0_94] : memref<4x1x128xf32, #tpu.memory_space<vmem>>, vector<1x1x128xf32>
    %128 = vector.shape_cast %127 : vector<1x1x128xf32> to vector<1x128xf32>
    %129 = vector.broadcast %128 : vector<1x128xf32> to vector<32x128xf32>
    %130 = arith.addf %126, %129 : vector<32x128xf32>
    %cst_95 = arith.constant 0.000000e+00 : f32
    %131 = vector.broadcast %cst_95 : f32 to vector<32x128xf32>
    %132 = arith.maximumf %130, %131 : vector<32x128xf32>
    %133 = arith.truncf %132 : vector<32x128xf32> to vector<32x128xbf16>
    %cst_96 = arith.constant dense<0.000000e+00> : vector<16x128xf32>
    %134 = tpu.matmul %7, %133, %cst_96 {dimension_numbers = #tpu.dot_dimension_numbers<[1], [0], [0], [1], [0, 0, 1, 1], [], []>} : vector<16x32xbf16>, vector<32x128xbf16>, vector<16x128xf32> -> vector<16x128xf32>
    %c64_i32_97 = arith.constant 64 : i32
    %135 = tpu.dynamic_rotate %134 by %c64_i32_97 dim 1 : vector<16x128xf32>, i32 -> vector<16x128xf32>
    %136 = arith.addf %107, %135 : vector<16x128xf32>
    %137 = arith.truncf %136 : vector<16x128xf32> to vector<16x128xbf16>
    %c2_98 = arith.constant 2 : index
    %c0_99 = arith.constant 0 : index
    %c0_100 = arith.constant 0 : index
    %138 = vector.load %arg11[%c2_98, %c0_99, %c0_100] : memref<4x128x128xbf16, #tpu.memory_space<vmem>>, vector<1x128x128xbf16>
    %139 = vector.shape_cast %138 : vector<1x128x128xbf16> to vector<128x128xbf16>
    %cst_101 = arith.constant dense<0.000000e+00> : vector<16x128xf32>
    %140 = tpu.matmul %137, %139, %cst_101 {dimension_numbers = #tpu.dot_dimension_numbers<[1], [0], [0], [1], [0, 0, 1, 1], [], []>} : vector<16x128xbf16>, vector<128x128xbf16>, vector<16x128xf32> -> vector<16x128xf32>
    %c2_102 = arith.constant 2 : index
    %c0_103 = arith.constant 0 : index
    %c0_104 = arith.constant 0 : index
    %141 = vector.load %arg12[%c2_102, %c0_103, %c0_104] : memref<4x1x128xf32, #tpu.memory_space<vmem>>, vector<1x1x128xf32>
    %142 = vector.shape_cast %141 : vector<1x1x128xf32> to vector<1x128xf32>
    %143 = vector.broadcast %142 : vector<1x128xf32> to vector<16x128xf32>
    %144 = arith.addf %140, %143 : vector<16x128xf32>
    %cst_105 = arith.constant 0.000000e+00 : f32
    %145 = vector.broadcast %cst_105 : f32 to vector<16x128xf32>
    %146 = arith.maximumf %144, %145 : vector<16x128xf32>
    %147 = arith.truncf %146 : vector<16x128xf32> to vector<16x128xbf16>
    %c2_106 = arith.constant 2 : index
    %c0_107 = arith.constant 0 : index
    %c0_108 = arith.constant 0 : index
    %148 = vector.load %arg13[%c2_106, %c0_107, %c0_108] : memref<4x128x128xbf16, #tpu.memory_space<vmem>>, vector<1x128x128xbf16>
    %149 = vector.shape_cast %148 : vector<1x128x128xbf16> to vector<128x128xbf16>
    %cst_109 = arith.constant dense<0.000000e+00> : vector<16x128xf32>
    %150 = tpu.matmul %147, %149, %cst_109 {dimension_numbers = #tpu.dot_dimension_numbers<[1], [0], [0], [1], [0, 0, 1, 1], [], []>} : vector<16x128xbf16>, vector<128x128xbf16>, vector<16x128xf32> -> vector<16x128xf32>
    %c2_110 = arith.constant 2 : index
    %c0_111 = arith.constant 0 : index
    %c0_112 = arith.constant 0 : index
    %151 = vector.load %arg14[%c2_110, %c0_111, %c0_112] : memref<4x1x128xf32, #tpu.memory_space<vmem>>, vector<1x1x128xf32>
    %152 = vector.shape_cast %151 : vector<1x1x128xf32> to vector<1x128xf32>
    %153 = vector.broadcast %152 : vector<1x128xf32> to vector<16x128xf32>
    %154 = arith.addf %150, %153 : vector<16x128xf32>
    %cst_113 = arith.constant 0.000000e+00 : f32
    %155 = vector.broadcast %cst_113 : f32 to vector<16x128xf32>
    %156 = arith.maximumf %154, %155 : vector<16x128xf32>
    %157 = arith.addf %107, %156 : vector<16x128xf32>
    %158 = arith.truncf %157 : vector<16x128xf32> to vector<16x128xbf16>
    %cst_114 = arith.constant dense<0.000000e+00> : vector<64x128xf32>
    %159 = tpu.matmul %6, %158, %cst_114 {dimension_numbers = #tpu.dot_dimension_numbers<[1], [0], [0], [1], [0, 0, 1, 1], [], []>} : vector<64x16xbf16>, vector<16x128xbf16>, vector<64x128xf32> -> vector<64x128xf32>
    %160 = vector.extract_strided_slice %159 {offsets = [0, 0], sizes = [32, 128], strides = [1, 1]} : vector<64x128xf32> to vector<32x128xf32>
    %161 = vector.extract_strided_slice %159 {offsets = [32, 0], sizes = [32, 128], strides = [1, 1]} : vector<64x128xf32> to vector<32x128xf32>
    %c64_i32_115 = arith.constant 64 : i32
    %162 = tpu.dynamic_rotate %161 by %c64_i32_115 dim 1 : vector<32x128xf32>, i32 -> vector<32x128xf32>
    %163 = arith.addf %160, %162 : vector<32x128xf32>
    %164 = arith.truncf %163 : vector<32x128xf32> to vector<32x128xbf16>
    %c3 = arith.constant 3 : index
    %c0_116 = arith.constant 0 : index
    %c0_117 = arith.constant 0 : index
    %165 = vector.load %arg7[%c3, %c0_116, %c0_117] : memref<4x128x128xbf16, #tpu.memory_space<vmem>>, vector<1x128x128xbf16>
    %166 = vector.shape_cast %165 : vector<1x128x128xbf16> to vector<128x128xbf16>
    %cst_118 = arith.constant dense<0.000000e+00> : vector<32x128xf32>
    %167 = tpu.matmul %164, %166, %cst_118 {dimension_numbers = #tpu.dot_dimension_numbers<[1], [0], [0], [1], [0, 0, 1, 1], [], []>} : vector<32x128xbf16>, vector<128x128xbf16>, vector<32x128xf32> -> vector<32x128xf32>
    %c3_119 = arith.constant 3 : index
    %c0_120 = arith.constant 0 : index
    %c0_121 = arith.constant 0 : index
    %168 = vector.load %arg8[%c3_119, %c0_120, %c0_121] : memref<4x32x128xf32, #tpu.memory_space<vmem>>, vector<1x32x128xf32>
    %169 = vector.shape_cast %168 : vector<1x32x128xf32> to vector<32x128xf32>
    %170 = arith.addf %167, %169 : vector<32x128xf32>
    %cst_122 = arith.constant 0.000000e+00 : f32
    %171 = vector.broadcast %cst_122 : f32 to vector<32x128xf32>
    %172 = arith.maximumf %170, %171 : vector<32x128xf32>
    %173 = arith.truncf %172 : vector<32x128xf32> to vector<32x128xbf16>
    %c3_123 = arith.constant 3 : index
    %c0_124 = arith.constant 0 : index
    %c0_125 = arith.constant 0 : index
    %174 = vector.load %arg9[%c3_123, %c0_124, %c0_125] : memref<4x128x128xbf16, #tpu.memory_space<vmem>>, vector<1x128x128xbf16>
    %175 = vector.shape_cast %174 : vector<1x128x128xbf16> to vector<128x128xbf16>
    %cst_126 = arith.constant dense<0.000000e+00> : vector<32x128xf32>
    %176 = tpu.matmul %173, %175, %cst_126 {dimension_numbers = #tpu.dot_dimension_numbers<[1], [0], [0], [1], [0, 0, 1, 1], [], []>} : vector<32x128xbf16>, vector<128x128xbf16>, vector<32x128xf32> -> vector<32x128xf32>
    %c3_127 = arith.constant 3 : index
    %c0_128 = arith.constant 0 : index
    %c0_129 = arith.constant 0 : index
    %177 = vector.load %arg10[%c3_127, %c0_128, %c0_129] : memref<4x1x128xf32, #tpu.memory_space<vmem>>, vector<1x1x128xf32>
    %178 = vector.shape_cast %177 : vector<1x1x128xf32> to vector<1x128xf32>
    %179 = vector.broadcast %178 : vector<1x128xf32> to vector<32x128xf32>
    %180 = arith.addf %176, %179 : vector<32x128xf32>
    %cst_130 = arith.constant 0.000000e+00 : f32
    %181 = vector.broadcast %cst_130 : f32 to vector<32x128xf32>
    %182 = arith.maximumf %180, %181 : vector<32x128xf32>
    %183 = arith.truncf %182 : vector<32x128xf32> to vector<32x128xbf16>
    %cst_131 = arith.constant dense<0.000000e+00> : vector<16x128xf32>
    %184 = tpu.matmul %7, %183, %cst_131 {dimension_numbers = #tpu.dot_dimension_numbers<[1], [0], [0], [1], [0, 0, 1, 1], [], []>} : vector<16x32xbf16>, vector<32x128xbf16>, vector<16x128xf32> -> vector<16x128xf32>
    %c64_i32_132 = arith.constant 64 : i32
    %185 = tpu.dynamic_rotate %184 by %c64_i32_132 dim 1 : vector<16x128xf32>, i32 -> vector<16x128xf32>
    %186 = arith.addf %157, %185 : vector<16x128xf32>
    %187 = arith.truncf %186 : vector<16x128xf32> to vector<16x128xbf16>
    %c3_133 = arith.constant 3 : index
    %c0_134 = arith.constant 0 : index
    %c0_135 = arith.constant 0 : index
    %188 = vector.load %arg11[%c3_133, %c0_134, %c0_135] : memref<4x128x128xbf16, #tpu.memory_space<vmem>>, vector<1x128x128xbf16>
    %189 = vector.shape_cast %188 : vector<1x128x128xbf16> to vector<128x128xbf16>
    %cst_136 = arith.constant dense<0.000000e+00> : vector<16x128xf32>
    %190 = tpu.matmul %187, %189, %cst_136 {dimension_numbers = #tpu.dot_dimension_numbers<[1], [0], [0], [1], [0, 0, 1, 1], [], []>} : vector<16x128xbf16>, vector<128x128xbf16>, vector<16x128xf32> -> vector<16x128xf32>
    %c3_137 = arith.constant 3 : index
    %c0_138 = arith.constant 0 : index
    %c0_139 = arith.constant 0 : index
    %191 = vector.load %arg12[%c3_137, %c0_138, %c0_139] : memref<4x1x128xf32, #tpu.memory_space<vmem>>, vector<1x1x128xf32>
    %192 = vector.shape_cast %191 : vector<1x1x128xf32> to vector<1x128xf32>
    %193 = vector.broadcast %192 : vector<1x128xf32> to vector<16x128xf32>
    %194 = arith.addf %190, %193 : vector<16x128xf32>
    %cst_140 = arith.constant 0.000000e+00 : f32
    %195 = vector.broadcast %cst_140 : f32 to vector<16x128xf32>
    %196 = arith.maximumf %194, %195 : vector<16x128xf32>
    %197 = arith.truncf %196 : vector<16x128xf32> to vector<16x128xbf16>
    %c3_141 = arith.constant 3 : index
    %c0_142 = arith.constant 0 : index
    %c0_143 = arith.constant 0 : index
    %198 = vector.load %arg13[%c3_141, %c0_142, %c0_143] : memref<4x128x128xbf16, #tpu.memory_space<vmem>>, vector<1x128x128xbf16>
    %199 = vector.shape_cast %198 : vector<1x128x128xbf16> to vector<128x128xbf16>
    %cst_144 = arith.constant dense<0.000000e+00> : vector<16x128xf32>
    %200 = tpu.matmul %197, %199, %cst_144 {dimension_numbers = #tpu.dot_dimension_numbers<[1], [0], [0], [1], [0, 0, 1, 1], [], []>} : vector<16x128xbf16>, vector<128x128xbf16>, vector<16x128xf32> -> vector<16x128xf32>
    %c3_145 = arith.constant 3 : index
    %c0_146 = arith.constant 0 : index
    %c0_147 = arith.constant 0 : index
    %201 = vector.load %arg14[%c3_145, %c0_146, %c0_147] : memref<4x1x128xf32, #tpu.memory_space<vmem>>, vector<1x1x128xf32>
    %202 = vector.shape_cast %201 : vector<1x1x128xf32> to vector<1x128xf32>
    %203 = vector.broadcast %202 : vector<1x128xf32> to vector<16x128xf32>
    %204 = arith.addf %200, %203 : vector<16x128xf32>
    %cst_148 = arith.constant 0.000000e+00 : f32
    %205 = vector.broadcast %cst_148 : f32 to vector<16x128xf32>
    %206 = arith.maximumf %204, %205 : vector<16x128xf32>
    %207 = arith.addf %157, %206 : vector<16x128xf32>
    %c0_149 = arith.constant 0 : index
    %c0_150 = arith.constant 0 : index
    %208 = vector.load %arg6[%c0_149, %c0_150] : memref<2x16xbf16, #tpu.memory_space<vmem>>, vector<2x16xbf16>
    %209 = arith.truncf %207 : vector<16x128xf32> to vector<16x128xbf16>
    %cst_151 = arith.constant dense<0.000000e+00> : vector<2x128xf32>
    %210 = tpu.matmul %208, %209, %cst_151 {dimension_numbers = #tpu.dot_dimension_numbers<[1], [0], [0], [1], [0, 0, 1, 1], [], []>} : vector<2x16xbf16>, vector<16x128xbf16>, vector<2x128xf32> -> vector<2x128xf32>
    %c0_152 = arith.constant 0 : index
    %c0_153 = arith.constant 0 : index
    %211 = vector.load %arg15[%c0_152, %c0_153] : memref<2x128xf32, #tpu.memory_space<vmem>>, vector<2x128xf32>
    tpu.vector_store %arg15[%c0_152, %c0_153], %210 {strides = array<i32>} : memref<2x128xf32, #tpu.memory_space<vmem>>, vector<2x128xf32>,
    return
  }
  func.func @transform_0(%arg0: i32) -> (i32, i32) {
    %c0_i32 = arith.constant 0 : i32
    %c0_i32_0 = arith.constant 0 : i32
    %c0_i32_1 = arith.constant 0 : i32
    return %c0_i32, %c0_i32_0 : i32, i32
  }
  func.func @transform_1(%arg0: i32) -> (i32, i32) {
    %c0_i32 = arith.constant 0 : i32
    %c0_i32_0 = arith.constant 0 : i32
    %c0_i32_1 = arith.constant 0 : i32
    return %c0_i32, %c0_i32_0 : i32, i32
  }
  func.func @transform_2(%arg0: i32) -> (i32, i32) {
    %c0_i32 = arith.constant 0 : i32
    %c0_i32_0 = arith.constant 0 : i32
    %c0_i32_1 = arith.constant 0 : i32
    return %c0_i32, %c0_i32_0 : i32, i32
  }
  func.func @transform_3(%arg0: i32) -> (i32, i32) {
    %c0_i32 = arith.constant 0 : i32
    %c0_i32_0 = arith.constant 0 : i32
    %c0_i32_1 = arith.constant 0 : i32
    return %c0_i32, %c0_i32_0 : i32, i32
  }
  func.func @transform_4(%arg0: i32) -> (i32, i32) {
    %c0_i32 = arith.constant 0 : i32
    %c0_i32_0 = arith.constant 0 : i32
    %c0_i32_1 = arith.constant 0 : i32
    return %c0_i32, %c0_i32_0 : i32, i32
  }
  func.func @transform_5(%arg0: i32) -> (i32, i32) {
    %c0_i32 = arith.constant 0 : i32
    %c0_i32_0 = arith.constant 0 : i32
    %c0_i32_1 = arith.constant 0 : i32
    return %c0_i32, %c0_i32_0 : i32, i32
  }
  func.func @transform_6(%arg0: i32) -> (i32, i32, i32) {
    %c0_i32 = arith.constant 0 : i32
    %c0_i32_0 = arith.constant 0 : i32
    %c0_i32_1 = arith.constant 0 : i32
    %c0_i32_2 = arith.constant 0 : i32
    return %c0_i32, %c0_i32_0, %c0_i32_1 : i32, i32, i32
  }
  func.func @transform_7(%arg0: i32) -> (i32, i32, i32) {
    %c0_i32 = arith.constant 0 : i32
    %c0_i32_0 = arith.constant 0 : i32
    %c0_i32_1 = arith.constant 0 : i32
    %c0_i32_2 = arith.constant 0 : i32
    return %c0_i32, %c0_i32_0, %c0_i32_1 : i32, i32, i32
  }
  func.func @transform_8(%arg0: i32) -> (i32, i32, i32) {
    %c0_i32 = arith.constant 0 : i32
    %c0_i32_0 = arith.constant 0 : i32
    %c0_i32_1 = arith.constant 0 : i32
    %c0_i32_2 = arith.constant 0 : i32
    return %c0_i32, %c0_i32_0, %c0_i32_1 : i32, i32, i32
  }
  func.func @transform_9(%arg0: i32) -> (i32, i32, i32) {
    %c0_i32 = arith.constant 0 : i32
    %c0_i32_0 = arith.constant 0 : i32
    %c0_i32_1 = arith.constant 0 : i32
    %c0_i32_2 = arith.constant 0 : i32
    return %c0_i32, %c0_i32_0, %c0_i32_1 : i32, i32, i32
  }
  func.func @transform_10(%arg0: i32) -> (i32, i32, i32) {
    %c0_i32 = arith.constant 0 : i32
    %c0_i32_0 = arith.constant 0 : i32
    %c0_i32_1 = arith.constant 0 : i32
    %c0_i32_2 = arith.constant 0 : i32
    return %c0_i32, %c0_i32_0, %c0_i32_1 : i32, i32, i32
  }
  func.func @transform_11(%arg0: i32) -> (i32, i32, i32) {
    %c0_i32 = arith.constant 0 : i32
    %c0_i32_0 = arith.constant 0 : i32
    %c0_i32_1 = arith.constant 0 : i32
    %c0_i32_2 = arith.constant 0 : i32
    return %c0_i32, %c0_i32_0, %c0_i32_1 : i32, i32, i32
  }
  func.func @transform_12(%arg0: i32) -> (i32, i32, i32) {
    %c0_i32 = arith.constant 0 : i32
    %c0_i32_0 = arith.constant 0 : i32
    %c0_i32_1 = arith.constant 0 : i32
    %c0_i32_2 = arith.constant 0 : i32
    return %c0_i32, %c0_i32_0, %c0_i32_1 : i32, i32, i32
  }
  func.func @transform_13(%arg0: i32) -> (i32, i32, i32) {
    %c0_i32 = arith.constant 0 : i32
    %c0_i32_0 = arith.constant 0 : i32
    %c0_i32_1 = arith.constant 0 : i32
    %c0_i32_2 = arith.constant 0 : i32
    return %c0_i32, %c0_i32_0, %c0_i32_1 : i32, i32, i32
  }
  func.func @transform_14(%arg0: i32) -> (i32, i32) {
    %c0_i32 = arith.constant 0 : i32
    %c0_i32_0 = arith.constant 0 : i32
    %c0_i32_1 = arith.constant 0 : i32
    return %c0_i32, %c0_i32_0 : i32, i32
  }
}

</mosaic_0001>

<bundles_post_ra>
// kernel: tpu_custom_call.1
= control target key start
LH: loop header
LB: loop body
LE: loop exit
PB: predicated region body
PF: predicated region fallthrough
CT: control target
= control target key end

     0   :  { %19 = vsyncpa [#allocation3], 0  ;;  %s4321_s0 = inlined_call_operand.vmem [shape: f32[16,11], index: 0, kind: input, shape index: {}]   ;;  %s4322_s1 = inlined_call_operand.vmem [shape: f32[11,128], index: 1, kind: input, shape index: {}]   ;;  %s4323_s2 = inlined_call_operand.vmem [shape: f32[1,128], index: 2, kind: input, shape index: {}]   ;;  %s4324_s3 = inlined_call_operand.vmem [shape: bf16[64,16], index: 3, kind: input, shape index: {}]   ;;  %s4325_s4 = inlined_call_operand.vmem [shape: bf16[16,32], index: 4, kind: input, shape index: {}]   ;;  %s4326_s5 = inlined_call_operand.vmem [shape: bf16[2,16], index: 5, kind: input, shape index: {}]   ;;  %s4327_s6 = inlined_call_operand.hbm [shape: bf16[4,128,128], index: 6, kind: input, shape index: {}]   ;;  %s4328_s7 = inlined_call_operand.hbm [shape: f32[4,32,128], index: 7, kind: input, shape index: {}]   ;;  %s4329_s8 = inlined_call_operand.hbm [shape: bf16[4,128,128], index: 8, kind: input, shape index: {}]   ;;  %s4330_s9 = inlined_call_operand.vmem [shape: f32[4,1,128], index: 9, kind: input, shape index: {}]   ;;  %s4331_s10 = inlined_call_operand.hbm [shape: bf16[4,128,128], index: 10, kind: input, shape index: {}]   ;;  %s4332_s11 = inlined_call_operand.vmem [shape: f32[4,1,128], index: 11, kind: input, shape index: {}]   ;;  %s4333_s12 = inlined_call_operand.hbm [shape: bf16[4,128,128], index: 12, kind: input, shape index: {}]   ;;  %s4334_s13 = inlined_call_operand.vmem [shape: f32[4,1,128], index: 13, kind: input, shape index: {}]   ;;  %s4335_s14 = inlined_call_operand.hbm [shape: f32[2,128], index: 14, kind: output, shape index: {}]  }
   0x1   :  { %20 = vsyncpa [#allocation6], 0 }
   0x2   :  { %21 = vsyncpa [#allocation9], 0 }
   0x3   :  { %22 = vsyncpa [#allocation4], 0  ;;  %s3856_s29 = smov [#allocation5]   ;;  %s3716_s17 = scalar_lea.hbm %s4328_s7, 2048 }
   0x4   :  { %s52_s30 = sshll.u32 %s3856_s29, 4  ;;  %p3717_p0 = scmp.ne.s32.totalorder %s4328_s7, %s3716_s17  ;;  %s53_s30 = int_to_ptr.vmem [resolvable:$true] %s52_s30 }
   0x5   :  { %p3720_p1 = scmp.lt.u32.totalorder %s3716_s17, %s4328_s7 }
   0x7   :  { %p3722_p2 = pnand %p3720_p1, %p3717_p0 }
   0x9   :  { %3725 = shalt.err (!%p3722_p2)
}
   0xa   :  { %s3726_s22 = scalar_lea.vmem %s53_s30, 2048  ;;  %p3731_p4 = scmp.lt.s32.totalorder %s53_s30, %s53_s30 }
   0xb   :  { %p3727_p3 = scmp.ne.s32.totalorder %s53_s30, %s3726_s22  ;;  %p3732_p5 = scmp.lt.s32.totalorder %s3726_s22, %s3726_s22 }
   0xd   :  { %p3733_p6 = por %p3732_p5, %p3731_p4 }
   0xf   :  { %p3734_p7 = pnand %p3733_p6, %p3727_p3 }
  0x11   :  { %3737 = shalt.err (!%p3734_p7)
}
  0x12   :  { %s3857_s23 = smov 128   ;;  %s3858_s24 = smov 8  }
  0x13   :  { %58 = dma.hbm_to_vmem [thread:$0]  %s4328_s7, 2048, %s53_s30, [#allocation6], %s3857_s23, %s3857_s23, %s3858_s24  }
  0x14   :  { %s3859_s27 = smov [#allocation8]   ;;  %s3860_s29 = smov [#allocation2]  }
  0x15   :  { %s78_s28 = sshll.u32 %s3859_s27, 4  ;;  %s40_s15 = sshll.u32 %s3860_s29, 4  ;;  %s79_s28 = int_to_ptr.vmem [resolvable:$true] %s78_s28  ;;  %s41_s15 = int_to_ptr.vmem [resolvable:$true] %s40_s15 }
  0x16   :  { %s3738_s18 = scalar_lea.hbm %s4331_s10, 4096 }
  0x17   :  { %p3739_p8 = scmp.ne.s32.totalorder %s4331_s10, %s3738_s18  ;;  %p3742_p9 = scmp.lt.u32.totalorder %s3738_s18, %s4331_s10 }
  0x19   :  { %p3744_p10 = pnand %p3742_p9, %p3739_p8 }
  0x1b   :  { %3747 = shalt.err (!%p3744_p10)
}
  0x1c   :  { %s3748_s7 = scalar_lea.vmem %s79_s28, 4096  ;;  %p3753_p12 = scmp.lt.s32.totalorder %s79_s28, %s79_s28 }
  0x1d   :  { %p3749_p11 = scmp.ne.s32.totalorder %s79_s28, %s3748_s7  ;;  %p3754_p13 = scmp.lt.s32.totalorder %s3748_s7, %s3748_s7 }
  0x1f   :  { %p3755_p0 = por %p3754_p13, %p3753_p12 }
  0x21   :  { %p3756_p1 = pnand %p3755_p0, %p3749_p11 }
  0x23   :  { %3759 = shalt.err (!%p3756_p1)
}
  0x24   :  { %s3861_s30 = smov 64   ;;  %s3862_s23 = smov 4  }
  0x25   :  { %84 = dma.hbm_to_vmem [thread:$0]  %s4331_s10, 4096, %s79_s28, [#allocation9], %s3861_s30, %s3861_s30, %s3862_s23  }
  0x26   :  { %s3760_s29 = scalar_lea.hbm %s4327_s6, 4096 }
  0x27   :  { %p3761_p2 = scmp.ne.s32.totalorder %s4327_s6, %s3760_s29  ;;  %p3764_p3 = scmp.lt.u32.totalorder %s3760_s29, %s4327_s6 }
  0x29   :  { %p3766_p4 = pnand %p3764_p3, %p3761_p2 }
  0x2b   :  { %3769 = shalt.err (!%p3766_p4)
}
  0x2c   :  { %s3770_s20 = scalar_lea.vmem %s41_s15, 4096  ;;  %p3775_p6 = scmp.lt.s32.totalorder %s41_s15, %s41_s15 }
  0x2d   :  { %p3771_p5 = scmp.ne.s32.totalorder %s41_s15, %s3770_s20  ;;  %p3776_p7 = scmp.lt.s32.totalorder %s3770_s20, %s3770_s20 }
  0x2f   :  { %p3777_p8 = por %p3776_p7, %p3775_p6 }
  0x31   :  { %p3778_p9 = pnand %p3777_p8, %p3771_p5 }
  0x33   :  { %3781 = shalt.err (!%p3778_p9)
}
  0x34   :  { %46 = dma.hbm_to_vmem [thread:$0]  %s4327_s6, 4096, %s41_s15, [#allocation3], %s3861_s30, %s3861_s30, %s3862_s23  }
  0x35   :  { %s3863_s21 = smov [#allocation7]   ;;  %s3864_s7 = smov [#allocation10]  }
  0x36   :  { %s64_s22 = sshll.u32 %s3863_s21, 4  ;;  %s92_s24 = sshll.u32 %s3864_s7, 4  ;;  %s65_s22 = int_to_ptr.vmem [resolvable:$true] %s64_s22  ;;  %s93_s24 = int_to_ptr.vmem [resolvable:$true] %s92_s24 }
  0x37   :  { %s3782_s27 = scalar_lea.hbm %s4329_s8, 4096 }
  0x38   :  { %p3783_p10 = scmp.ne.s32.totalorder %s4329_s8, %s3782_s27  ;;  %p3786_p11 = scmp.lt.u32.totalorder %s3782_s27, %s4329_s8 }
  0x3a   :  { %p3788_p12 = pnand %p3786_p11, %p3783_p10 }
  0x3c   :  { %3791 = shalt.err (!%p3788_p12)
}
  0x3d   :  { %s3792_s6 = scalar_lea.vmem %s65_s22, 4096  ;;  %p3797_p0 = scmp.lt.s32.totalorder %s65_s22, %s65_s22 }
  0x3e   :  { %p3793_p13 = scmp.ne.s32.totalorder %s65_s22, %s3792_s6  ;;  %p3798_p1 = scmp.lt.s32.totalorder %s3792_s6, %s3792_s6 }
  0x40   :  { %p3799_p2 = por %p3798_p1, %p3797_p0 }
  0x42   :  { %p3800_p3 = pnand %p3799_p2, %p3793_p13 }
  0x44   :  { %3803 = shalt.err (!%p3800_p3)
}
  0x45   :  { %70 = dma.hbm_to_vmem [thread:$0]  %s4329_s8, 4096, %s65_s22, [#allocation6], %s3861_s30, %s3861_s30, %s3862_s23  }
  0x46   :  { %s3804_s28 = scalar_lea.hbm %s4333_s12, 4096 }
  0x47   :  { %p3805_p4 = scmp.ne.s32.totalorder %s4333_s12, %s3804_s28  ;;  %p3808_p5 = scmp.lt.u32.totalorder %s3804_s28, %s4333_s12 }
  0x49   :  { %p3810_p6 = pnand %p3808_p5, %p3805_p4 }
  0x4b   :  { %3813 = shalt.err (!%p3810_p6)
}
  0x4c   :  { %s3814_s27 = scalar_lea.vmem %s93_s24, 4096  ;;  %p3819_p8 = scmp.lt.s32.totalorder %s93_s24, %s93_s24 }
  0x4d   :  { %p3815_p7 = scmp.ne.s32.totalorder %s93_s24, %s3814_s27  ;;  %p3820_p9 = scmp.lt.s32.totalorder %s3814_s27, %s3814_s27 }
  0x4f   :  { %p3821_p10 = por %p3820_p9, %p3819_p8 }
  0x51   :  { %p3822_p11 = pnand %p3821_p10, %p3815_p7 }
  0x53   :  { %3825 = shalt.err (!%p3822_p11)
}
  0x54   :  { %98 = dma.hbm_to_vmem [thread:$0]  %s4333_s12, 4096, %s93_s24, [#allocation9], %s3861_s30, %s3861_s30, %s3862_s23  }
  0x55   :  { %3848 = dma.done.wait [#allocation3], 4096  }
  0x56   :  { %3849 = vsyncadd [#allocation3], 4294963200 }
  0x57   :  { %3850 = dma.done.wait [#allocation6], 6144  }
  0x58   :  { %3851 = vsyncadd [#allocation6], 4294961152 }
  0x59   :  { %3852 = dma.done.wait [#allocation9], 8192  }
  0x5a   :  { %3853 = vsyncadd [#allocation9], 4294959104  ;;  %vm135_vm0 = vcmask 1042432   ;;  %vm128_vm1 = vcmask 89088   ;;  %vm3865_vm2 = vmmov 1   ;;  %v119_v0 = vld [vmem:[%s4322_s1] sm:$0xff] }
  0x5b   :  { %vm3560_vm3 = vmpackc.low %vm135_vm0, %vm3865_vm2  ;;  %v120_v1 = vld [vmem:[%s4322_s1 + $0x8] sm:$0x7]  ;;  %v117_v2 = vld [vmem:[%s4321_s0] sm:$0xff]  ;;  %vm245_vm4 = vcmask 130048   ;;  %vm3867_vm5 = vmmov 0   ;;  %vm591_vm6 = vcmask 261120  }
  0x5c   :  { %v3559_v3 = vpack.c.bf16 %v120_v1, %v119_v0  ;;  %3158 = vmatprep.mubr.msk.f32.mxu0 %vm128_vm1, %v117_v2  ;;  %v118_v4 = vld [vmem:[%s4321_s0 + $0x8] sm:$0xff]  ;;  %v4031_v5 = vld [vmem:[%s4324_s3] sm:$0xff]   ;;  %v4052_v13 = vld [vmem:[%s4324_s3 + $0x10] sm:$0xff]  }
  0x5d   :  { %3163 = vmatprep.mubr.msk.bf16.mxu1 %vm245_vm4, %v4031_v5  ;;  %v2785_v6 = vld [vmem:[%s4323_s2] ss:$0 sm:$0xff]  ;;  %v4047_v12 = vld [vmem:[%s4324_s3 + $0x8] sm:$0xff]   ;;  %v4061_v14 = vld [vmem:[%s4324_s3 + $0x18] sm:$0xff]  }
  0x5e   :  { %3561 = vmatprep.subr.msk.bf16.mxu0 %vm3560_vm3, %v3559_v3  ;;  %v3582_v15 = vld [vmem:[#allocation2] sm:$0xff]   ;;  %v3583_v16 = vld [vmem:[#allocation2 + $0x8] sm:$0xff]   ;;  %v3584_v17 = vld [vmem:[#allocation2 + $0x10] sm:$0xff]  }
  0x5f   :  { %3564 = vmatpush3.bf16.msk.msra.mxu0 %vm3560_vm3, %v3559_v3  ;;  %v3585_v18 = vld [vmem:[#allocation2 + $0x18] sm:$0xff]   ;;  %v3586_v19 = vld [vmem:[#allocation2 + $0x20] sm:$0xff]   ;;  %v3587_v20 = vld [vmem:[#allocation2 + $0x28] sm:$0xff]   ;;  %v3866_v3 = vmov 0.0  }
  0x60   :  { %3171 = vmatprep.subr.bf16.mxu0 %v3582_v15  ;;  %v3588_v21 = vld [vmem:[#allocation2 + $0x30] sm:$0xff]   ;;  %v3589_v23 = vld [vmem:[#allocation2 + $0x38] sm:$0xff]   ;;  %v3590_v27 = vld [vmem:[#allocation7] sm:$0xff]  }
  0x61   :  { %v3591_v28 = vld [vmem:[#allocation7 + $0x8] sm:$0xff]   ;;  %v3592_v32 = vld [vmem:[#allocation7 + $0x10] sm:$0xff]   ;;  %v3593_v34 = vld [vmem:[#allocation7 + $0x18] sm:$0xff]  }
  0x62   :  { %3159 = vmatmul.mubr.msk.f32.vlgmr.msra.gmra.mrb[0].mxu0 %vm128_vm1, %v118_v4  ;;  %v3594_v35 = vld [vmem:[#allocation7 + $0x20] sm:$0xff]   ;;  %v3595_v36 = vld [vmem:[#allocation7 + $0x28] sm:$0xff]   ;;  %v3596_v47 = vld [vmem:[#allocation7 + $0x30] sm:$0xff]  }
  0x63   :  { %3172 = vmatpush3.bf16.msra.mxu0 %v3582_v15  ;;  %v3597_v48 = vld [vmem:[#allocation7 + $0x38] sm:$0xff]   ;;  %v355_v49 = vld [vmem:[#allocation5 + $0x10] sm:$0xff]  ;;  %v353_v50 = vld [vmem:[#allocation5] sm:$0xff] }
  0x64   :  { %3173 = vmatprep.subr.bf16.mxu0 %v3583_v16  ;;  %v356_v52 = vld [vmem:[#allocation5 + $0x18] sm:$0xff]  ;;  %v354_v55 = vld [vmem:[#allocation5 + $0x8] sm:$0xff]  ;;  %v2805_v4 = vld [vmem:[%s4330_s9] ss:$0 sm:$0xff] }
  0x67   :  { %3174 = vmatpush3.bf16.msra.mxu0 %v3583_v16 }
  0x68   :  { %3175 = vmatprep.subr.bf16.mxu0 %v3584_v17 }
  0x6b   :  { %3176 = vmatpush3.bf16.msra.mxu0 %v3584_v17 }
  0x6c   :  { %3177 = vmatprep.subr.bf16.mxu0 %v3585_v18 }
  0x6f   :  { %3178 = vmatpush3.bf16.msra.mxu0 %v3585_v18 }
  0x70   :  { %3179 = vmatprep.subr.bf16.mxu0 %v3586_v19 }
  0x73   :  { %3180 = vmatpush3.bf16.msra.mxu0 %v3586_v19 }
  0x74   :  { %3181 = vmatprep.subr.bf16.mxu0 %v3587_v20 }
  0x77   :  { %3182 = vmatpush3.bf16.msra.mxu0 %v3587_v20 }
  0x78   :  { %3183 = vmatprep.subr.bf16.mxu0 %v3588_v21 }
  0x7b   :  { %3184 = vmatpush3.bf16.msra.mxu0 %v3588_v21 }
  0x7c   :  { %3185 = vmatprep.subr.bf16.mxu0 %v3589_v23 }
  0x7f   :  { %3186 = vmatpush3.bf16.msra.mxu0 %v3589_v23 }
  0x80   :  { %3211 = vmatprep.subr.bf16.mxu0 %v3866_v3 }
 0x135   :  { %v3160_v7 = vpop.f32.mrb[0].mxu0 }
 0x136   :  { %v4038_v8 = vadd.f32 %v3160_v7, %v2785_v6  ;;  %v205_v9 = vpop.f32.mrb[1].mxu0 }
 0x137   :  { %v4040_v10 = vadd.f32 %v2785_v6, %v205_v9 }
 0x139   :  { %v224_v11 = vpack.c.bf16 %v4038_v8, %v4040_v10 }
 0x13b   :  { %3161 = vmatprep.subr.bf16.mxu1 %v224_v11 }
 0x13c   :  { %3162 = vmatpush3.bf16.msra.mxu1 %v224_v11 }
 0x13d   :  { %3191 = vmatprep.subr.bf16.mxu1 %v3590_v27 }
 0x13f   :  { %3164 = vmatmul.mubr.msk.bf16.vlgmr.msra.gmra.mrb[0].mxu1 %vm245_vm4, %v4047_v12 }
 0x140   :  { %3167 = vmatprep.mubr.msk.bf16.mxu1 %vm245_vm4, %v4052_v13  ;;  %3192 = vmatpush3.bf16.msra.mxu1 %v3590_v27  ;;  %v3600_v27 = vld [vmem:[#allocation8 + $0x8] sm:$0xff]  }
 0x141   :  { %3193 = vmatprep.subr.bf16.mxu1 %v3591_v28 }
 0x144   :  { %3194 = vmatpush3.bf16.msra.mxu1 %v3591_v28  ;;  %v3601_v28 = vld [vmem:[#allocation8 + $0x10] sm:$0xff]  }
 0x145   :  { %3195 = vmatprep.subr.bf16.mxu1 %v3592_v32 }
 0x147   :  { %3168 = vmatmul.mubr.msk.bf16.gmra.mrb[4].mxu1 %vm245_vm4, %v4061_v14 }
 0x148   :  { %3196 = vmatpush3.bf16.msra.mxu1 %v3592_v32  ;;  %v3605_v32 = vld [vmem:[#allocation8 + $0x30] sm:$0xff]  }
 0x149   :  { %3197 = vmatprep.subr.bf16.mxu1 %v3593_v34 }
 0x14c   :  { %3198 = vmatpush3.bf16.msra.mxu1 %v3593_v34  ;;  %v3607_v34 = vld [vmem:[#allocation10] sm:$0xff]  }
 0x14d   :  { %3199 = vmatprep.subr.bf16.mxu1 %v3594_v35 }
 0x150   :  { %3200 = vmatpush3.bf16.msra.mxu1 %v3594_v35  ;;  %v3608_v35 = vld [vmem:[#allocation10 + $0x8] sm:$0xff]  }
 0x151   :  { %3201 = vmatprep.subr.bf16.mxu1 %v3595_v36 }
 0x154   :  { %3202 = vmatpush3.bf16.msra.mxu1 %v3595_v36 }
 0x155   :  { %3203 = vmatprep.subr.bf16.mxu1 %v3596_v47 }
 0x158   :  { %3204 = vmatpush3.bf16.msra.mxu1 %v3596_v47 }
 0x159   :  { %3205 = vmatprep.subr.bf16.mxu1 %v3597_v48 }
 0x15c   :  { %3206 = vmatpush3.bf16.msra.mxu1 %v3597_v48 }
 0x15d   :  { %3219 = vmatprep.subr.bf16.mxu1 %v3866_v3 }
 0x212   :  { %v3165_v22 = vpop.f32.mrb[0].mxu1 }
 0x213   :  { %v292_v24 = vpop.f32.mrb[1].mxu1 }
 0x214   :  { %v3166_v25 = vpop.f32.mrb[2].mxu1 }
 0x215   :  { %v295_v26 = vpop.f32.mrb[3].mxu1 }
 0x21a   :  { %v3169_v29 = vpop.f32.mrb[4].mxu1 }
 0x21b   :  { %327 = vrot.lane.b32.xlu1 %v3169_v29, %s3861_s30  ;;  %v308_v30 = vpop.f32.mrb[5].mxu1  ;;  %v3602_v29 = vld [vmem:[#allocation8 + $0x18] sm:$0xff]  }
 0x21c   :  { %323 = vrot.lane.b32.xlu0 %v308_v30, %s3861_s30  ;;  %v3170_v31 = vpop.f32.mrb[6].mxu1  ;;  %v3603_v30 = vld [vmem:[#allocation8 + $0x20] sm:$0xff]  }
 0x21d   :  { %v311_v33 = vpop.f32.mrb[7].mxu1 }
 0x21f   :  { %329 = vrot.lane.b32.xlu1 %v3170_v31, %s3861_s30  ;;  %v3604_v31 = vld [vmem:[#allocation8 + $0x28] sm:$0xff]  }
 0x220   :  { %325 = vrot.lane.b32.xlu0 %v311_v33, %s3861_s30  ;;  %v3606_v33 = vld [vmem:[#allocation8 + $0x38] sm:$0xff]  }
 0x28d   :  { %v328_v37 = vpop.permute.xlu1 %327 }
 0x28e   :  { %v324_v38 = vpop.permute.xlu0 %323  ;;  %v333_v40 = vadd.f32 %v3165_v22, %v328_v37  ;;  %v3609_v37 = vld [vmem:[#allocation10 + $0x10] sm:$0xff]  }
 0x28f   :  { %v331_v43 = vadd.f32 %v324_v38, %v292_v24 }
 0x291   :  { %v330_v39 = vpop.permute.xlu1 %329 }
 0x292   :  { %v334_v41 = vadd.f32 %v3166_v25, %v330_v39  ;;  %v326_v42 = vpop.permute.xlu0 %325  ;;  %v4082_v25 = vld [vmem:[%s4325_s4] sm:$0xff]  }
 0x293   :  { %v332_v44 = vadd.f32 %v326_v42, %v295_v26  ;;  %v3599_v26 = vld [vmem:[#allocation8] sm:$0xff]  }
 0x294   :  { %v336_v45 = vpack.c.bf16 %v334_v41, %v333_v40  ;;  %v3610_v41 = vld [vmem:[#allocation10 + $0x18] sm:$0xff]   ;;  %v3611_v42 = vld [vmem:[#allocation10 + $0x20] sm:$0xff]  }
 0x295   :  { %v335_v46 = vpack.c.bf16 %v332_v44, %v331_v43  ;;  %v3612_v43 = vld [vmem:[#allocation10 + $0x28] sm:$0xff]  }
 0x297   :  { %3187 = vmatprep.mubr.bf16.mxu0 %v335_v46 }
 0x298   :  { %3188 = vmatmul.mubr.bf16.vlgmr.msra.gmra.mrb[4].mxu0 %v336_v45 }
 0x299   :  { %3215 = vmatprep.mubr.msk.bf16.mxu0 %vm3867_vm5, %v3866_v3 }
 0x36b   :  { %v3189_v51 = vpop.f32.mrb[4].mxu0 }
 0x36c   :  { %v448_v53 = vadd.f32 %v3189_v51, %v355_v49  ;;  %v439_v54 = vpop.f32.mrb[5].mxu0  ;;  %v3613_v49 = vld [vmem:[#allocation10 + $0x30] sm:$0xff]   ;;  %v2816_v51 = vld [vmem:[%s4332_s11] ss:$0 sm:$0xff] }
 0x36d   :  { %v440_v56 = vadd.f32 %v439_v54, %v353_v50  ;;  %v3190_v57 = vpop.f32.mrb[6].mxu0  ;;  %v3614_v50 = vld [vmem:[#allocation10 + $0x38] sm:$0xff]  }
 0x36e   :  { %v451_v58 = vadd.f32 %v3190_v57, %v356_v52  ;;  %v442_v59 = vpop.f32.mrb[7].mxu0  ;;  %v456_v61 = vmax.f32 %v448_v53, 0.0 }
 0x36f   :  { %v443_v60 = vadd.f32 %v442_v59, %v354_v55  ;;  %v454_v63 = vmax.f32 %v440_v56, 0.0 }
 0x370   :  { %v457_v62 = vmax.f32 %v451_v58, 0.0 }
 0x371   :  { %v455_v0 = vmax.f32 %v443_v60, 0.0 }
 0x372   :  { %v459_v1 = vpack.c.bf16 %v457_v62, %v456_v61  ;;  %v2825_v61 = vld [vmem:[%s4334_s13] ss:$0 sm:$0xff] }
 0x373   :  { %v458_v2 = vpack.c.bf16 %v455_v0, %v454_v63 }
 0x375   :  { %3207 = vmatprep.mubr.bf16.mxu1 %v458_v2 }
 0x376   :  { %3208 = vmatmul.mubr.bf16.vlgmr.msra.gmra.mrb[8].mxu1 %v459_v1 }
 0x377   :  { %3235 = vmatprep.mubr.msk.bf16.mxu1 %vm3867_vm5, %v3866_v3  ;;  %3220 = vmatpush3.bf16.msra.mxu1 %v3599_v26 }
 0x378   :  { %3221 = vmatprep.subr.bf16.mxu1 %v3866_v3 }
 0x37b   :  { %3222 = vmatpush3.bf16.msra.mxu1 %v3600_v27  ;;  %v3623_v27 = vld [vmem:[#allocation7 + $0x40] sm:$0xff]  }
 0x37c   :  { %3223 = vmatprep.subr.bf16.mxu1 %v3866_v3 }
 0x37f   :  { %3224 = vmatpush3.bf16.msra.mxu1 %v3601_v28  ;;  %v3624_v28 = vld [vmem:[#allocation7 + $0x48] sm:$0xff]  }
 0x380   :  { %3225 = vmatprep.subr.bf16.mxu1 %v3866_v3 }
 0x383   :  { %3226 = vmatpush3.bf16.msra.mxu1 %v3602_v29 }
 0x384   :  { %3227 = vmatprep.subr.bf16.mxu1 %v3866_v3 }
 0x387   :  { %3228 = vmatpush3.bf16.msra.mxu1 %v3603_v30 }
 0x388   :  { %3229 = vmatprep.subr.bf16.mxu1 %v3866_v3 }
 0x38b   :  { %3230 = vmatpush3.bf16.msra.mxu1 %v3604_v31 }
 0x38c   :  { %3231 = vmatprep.subr.bf16.mxu1 %v3866_v3 }
 0x38f   :  { %3232 = vmatpush3.bf16.msra.mxu1 %v3605_v32 }
 0x390   :  { %3233 = vmatprep.subr.bf16.mxu1 %v3866_v3 }
 0x393   :  { %3234 = vmatpush3.bf16.msra.mxu1 %v3606_v33  ;;  %v3625_v33 = vld [vmem:[#allocation7 + $0x50] sm:$0xff]  }
 0x449   :  { %v3209_v6 = vpop.f32.mrb[8].mxu1 }
 0x44a   :  { %v574_v7 = vadd.f32 %v3209_v6, %v2805_v4  ;;  %v565_v9 = vpop.f32.mrb[9].mxu1 }
 0x44b   :  { %v566_v11 = vadd.f32 %v2805_v4, %v565_v9  ;;  %v3210_v15 = vpop.f32.mrb[10].mxu1 }
 0x44c   :  { %v577_v16 = vadd.f32 %v3210_v15, %v2805_v4  ;;  %v568_v17 = vpop.f32.mrb[11].mxu1  ;;  %v582_v19 = vmax.f32 %v574_v7, 0.0 }
 0x44d   :  { %v569_v18 = vadd.f32 %v2805_v4, %v568_v17  ;;  %v580_v21 = vmax.f32 %v566_v11, 0.0  ;;  %v3618_v17 = vld [vmem:[#allocation2 + $0x58] sm:$0xff]  }
 0x44e   :  { %v583_v20 = vmax.f32 %v577_v16, 0.0  ;;  %v3615_v16 = vld [vmem:[#allocation2 + $0x40] sm:$0xff]  }
 0x44f   :  { %v581_v22 = vmax.f32 %v569_v18, 0.0  ;;  %v3619_v18 = vld [vmem:[#allocation2 + $0x60] sm:$0xff]  }
 0x450   :  { %v585_v23 = vpack.c.bf16 %v583_v20, %v582_v19  ;;  %v3620_v19 = vld [vmem:[#allocation2 + $0x68] sm:$0xff]   ;;  %v3621_v20 = vld [vmem:[#allocation2 + $0x70] sm:$0xff]  }
 0x451   :  { %v584_v24 = vpack.c.bf16 %v581_v22, %v580_v21 }
 0x453   :  { %3212 = vmatpush3.bf16.msra.mxu0 %v584_v24 }
 0x454   :  { %3213 = vmatprep.subr.bf16.mxu0 %v3866_v3 }
 0x457   :  { %3214 = vmatpush3.bf16.msra.mxu0 %v585_v23  ;;  %v3622_v23 = vld [vmem:[#allocation2 + $0x78] sm:$0xff]  }
 0x458   :  { %3239 = vmatprep.subr.bf16.mxu0 %v3866_v3 }
 0x45a   :  { %3216 = vmatmul.mubr.msk.bf16.vlgmr.msra.gmra.mrb[8].mxu0 %vm591_vm6, %v4082_v25 }
 0x45b   :  { %3255 = vmatprep.mubr.msk.bf16.mxu0 %vm3867_vm5, %v3866_v3  ;;  %3240 = vmatpush3.bf16.msra.mxu0 %v3607_v34  ;;  %v3626_v34 = vld [vmem:[#allocation7 + $0x58] sm:$0xff]  }
 0x45c   :  { %3241 = vmatprep.subr.bf16.mxu0 %v3866_v3 }
 0x45f   :  { %3242 = vmatpush3.bf16.msra.mxu0 %v3608_v35  ;;  %v3627_v35 = vld [vmem:[#allocation7 + $0x60] sm:$0xff]  }
 0x460   :  { %3243 = vmatprep.subr.bf16.mxu0 %v3866_v3 }
 0x463   :  { %3244 = vmatpush3.bf16.msra.mxu0 %v3609_v37 }
 0x464   :  { %3245 = vmatprep.subr.bf16.mxu0 %v3866_v3 }
 0x467   :  { %3246 = vmatpush3.bf16.msra.mxu0 %v3610_v41 }
 0x468   :  { %3247 = vmatprep.subr.bf16.mxu0 %v3866_v3 }
 0x46b   :  { %3248 = vmatpush3.bf16.msra.mxu0 %v3611_v42 }
 0x46c   :  { %3249 = vmatprep.subr.bf16.mxu0 %v3866_v3 }
 0x46f   :  { %3250 = vmatpush3.bf16.msra.mxu0 %v3612_v43 }
 0x470   :  { %3251 = vmatprep.subr.bf16.mxu0 %v3866_v3 }
 0x473   :  { %3252 = vmatpush3.bf16.msra.mxu0 %v3613_v49  ;;  %v974_v49 = vld [vmem:[#allocation5 + $0x30] sm:$0xff] }
 0x474   :  { %3253 = vmatprep.subr.bf16.mxu0 %v3866_v3 }
 0x477   :  { %3254 = vmatpush3.bf16.msra.mxu0 %v3614_v50  ;;  %v972_v50 = vld [vmem:[#allocation5 + $0x20] sm:$0xff] }
 0x478   :  { %3269 = vmatprep.subr.bf16.mxu0 %v3615_v16 }
 0x52d   :  { %v629_v36 = vpop.f32.mrb[8].mxu0 }
 0x52e   :  { %636 = vrot.lane.b32.xlu0 %v629_v36, %s3861_s30  ;;  %v3217_v38 = vpop.f32.mrb[9].mxu0  ;;  %v3628_v36 = vld [vmem:[#allocation7 + $0x68] sm:$0xff]  }
 0x52f   :  { %v632_v39 = vpop.f32.mrb[10].mxu0 }
 0x530   :  { %638 = vrot.lane.b32.xlu1 %v632_v39, %s3861_s30  ;;  %v3218_v40 = vpop.f32.mrb[11].mxu0 }
 0x5a0   :  { %v637_v44 = vpop.permute.xlu0 %636 }
 0x5a1   :  { %v640_v46 = vadd.f32 %v637_v44, %v4040_v10 }
 0x5a2   :  { %v639_v45 = vpop.permute.xlu1 %638 }
 0x5a3   :  { %v641_v47 = vadd.f32 %v639_v45, %v4038_v8 }
 0x5a5   :  { %v642_v48 = vpack.c.bf16 %v641_v47, %v640_v46  ;;  %v3629_v47 = vld [vmem:[#allocation7 + $0x70] sm:$0xff]  }
 0x5a7   :  { %3236 = vmatmul.mubr.bf16.vlgmr.msra.gmra.mrb[12].mxu1 %v642_v48  ;;  %v3630_v48 = vld [vmem:[#allocation7 + $0x78] sm:$0xff]  }
 0x5a8   :  { %3261 = vmatprep.mubr.msk.bf16.mxu1 %vm245_vm4, %v4031_v5 }
 0x67a   :  { %v748_v52 = vpop.f32.mrb[12].mxu1 }
 0x67b   :  { %v749_v53 = vadd.f32 %v2816_v51, %v748_v52  ;;  %v3237_v54 = vpop.f32.mrb[13].mxu1  ;;  %v975_v52 = vld [vmem:[#allocation5 + $0x38] sm:$0xff] }
 0x67c   :  { %v751_v55 = vpop.f32.mrb[14].mxu1 }
 0x67d   :  { %v752_v56 = vadd.f32 %v2816_v51, %v751_v55  ;;  %v3238_v57 = vpop.f32.mrb[15].mxu1  ;;  %v755_v58 = vmax.f32 %v749_v53, 0.0  ;;  %v973_v55 = vld [vmem:[#allocation5 + $0x28] sm:$0xff] }
 0x67f   :  { %v756_v59 = vmax.f32 %v752_v56, 0.0 }
 0x681   :  { %v757_v60 = vpack.c.bf16 %v756_v59, %v755_v58 }
 0x683   :  { %3256 = vmatmul.mubr.bf16.vlgmr.msra.gmra.mrb[12].mxu0 %v757_v60 }
 0x684   :  { %3270 = vmatpush3.bf16.msra.mxu0 %v3615_v16 }
 0x756   :  { %v863_v62 = vpop.f32.mrb[12].mxu0 }
 0x757   :  { %v864_v63 = vadd.f32 %v2825_v61, %v863_v62  ;;  %v3257_v0 = vpop.f32.mrb[13].mxu0 }
 0x758   :  { %v866_v1 = vpop.f32.mrb[14].mxu0 }
 0x759   :  { %v870_v2 = vmax.f32 %v864_v63, 0.0  ;;  %v867_v4 = vadd.f32 %v2825_v61, %v866_v1  ;;  %v3258_v6 = vpop.f32.mrb[15].mxu0 }
 0x75b   :  { %v871_v7 = vmax.f32 %v867_v4, 0.0  ;;  %v4116_v9 = vadd.f32 %v870_v2, %v4040_v10  ;;  %v3616_v10 = vld [vmem:[#allocation2 + $0x48] sm:$0xff]   ;;  %v2847_v4 = vld [vmem:[%s4330_s9 + $0x1] ss:$0 sm:$0xff] }
 0x75c   :  { %3271 = vmatprep.subr.bf16.mxu0 %v3616_v10 }
 0x75d   :  { %v4119_v11 = vadd.f32 %v871_v7, %v4038_v8  ;;  %v3617_v8 = vld [vmem:[#allocation2 + $0x50] sm:$0xff]   ;;  %3272 = vmatpush3.bf16.msra.mxu0 %v3616_v10 }
 0x75e   :  { %3273 = vmatprep.subr.bf16.mxu0 %v3617_v8 }
 0x75f   :  { %v874_v15 = vpack.c.bf16 %v4119_v11, %v4116_v9 }
 0x761   :  { %3259 = vmatprep.subr.bf16.mxu1 %v874_v15  ;;  %3274 = vmatpush3.bf16.msra.mxu0 %v3617_v8 }
 0x762   :  { %3260 = vmatpush3.bf16.msra.mxu1 %v874_v15  ;;  %3275 = vmatprep.subr.bf16.mxu0 %v3618_v17 }
 0x763   :  { %3289 = vmatprep.subr.bf16.mxu1 %v3623_v27 }
 0x765   :  { %3262 = vmatmul.mubr.msk.bf16.vlgmr.msra.gmra.mrb[16].mxu1 %vm245_vm4, %v4047_v12  ;;  %3276 = vmatpush3.bf16.msra.mxu0 %v3618_v17 }
 0x766   :  { %3265 = vmatprep.mubr.msk.bf16.mxu1 %vm245_vm4, %v4052_v13  ;;  %3277 = vmatprep.subr.bf16.mxu0 %v3619_v18 }
 0x767   :  { %3290 = vmatpush3.bf16.msra.mxu1 %v3623_v27  ;;  %v3632_v27 = vld [vmem:[#allocation8 + $0x48] sm:$0xff]  }
 0x768   :  { %3291 = vmatprep.subr.bf16.mxu1 %v3624_v28 }
 0x769   :  { %3278 = vmatpush3.bf16.msra.mxu0 %v3619_v18 }
 0x76a   :  { %3279 = vmatprep.subr.bf16.mxu0 %v3620_v19 }
 0x76b   :  { %3292 = vmatpush3.bf16.msra.mxu1 %v3624_v28  ;;  %v3633_v28 = vld [vmem:[#allocation8 + $0x50] sm:$0xff]  }
 0x76c   :  { %3293 = vmatprep.subr.bf16.mxu1 %v3625_v33 }
 0x76d   :  { %3266 = vmatmul.mubr.msk.bf16.gmra.mrb[20].mxu1 %vm245_vm4, %v4061_v14  ;;  %3280 = vmatpush3.bf16.msra.mxu0 %v3620_v19 }
 0x76e   :  { %3281 = vmatprep.subr.bf16.mxu0 %v3621_v20 }
 0x76f   :  { %3294 = vmatpush3.bf16.msra.mxu1 %v3625_v33  ;;  %v3638_v33 = vld [vmem:[#allocation8 + $0x78] sm:$0xff]  }
 0x770   :  { %3295 = vmatprep.subr.bf16.mxu1 %v3626_v34 }
 0x771   :  { %3282 = vmatpush3.bf16.msra.mxu0 %v3621_v20 }
 0x772   :  { %3283 = vmatprep.subr.bf16.mxu0 %v3622_v23 }
 0x773   :  { %3296 = vmatpush3.bf16.msra.mxu1 %v3626_v34  ;;  %v3639_v34 = vld [vmem:[#allocation10 + $0x40] sm:$0xff]  }
 0x774   :  { %3297 = vmatprep.subr.bf16.mxu1 %v3627_v35 }
 0x775   :  { %3284 = vmatpush3.bf16.msra.mxu0 %v3622_v23 }
 0x776   :  { %3309 = vmatprep.subr.bf16.mxu0 %v3866_v3 }
 0x777   :  { %3298 = vmatpush3.bf16.msra.mxu1 %v3627_v35  ;;  %v3640_v35 = vld [vmem:[#allocation10 + $0x48] sm:$0xff]  }
 0x778   :  { %3299 = vmatprep.subr.bf16.mxu1 %v3628_v36 }
 0x77b   :  { %3300 = vmatpush3.bf16.msra.mxu1 %v3628_v36 }
 0x77c   :  { %3301 = vmatprep.subr.bf16.mxu1 %v3629_v47 }
 0x77f   :  { %3302 = vmatpush3.bf16.msra.mxu1 %v3629_v47 }
 0x780   :  { %3303 = vmatprep.subr.bf16.mxu1 %v3630_v48 }
 0x783   :  { %3304 = vmatpush3.bf16.msra.mxu1 %v3630_v48 }
 0x784   :  { %3317 = vmatprep.subr.bf16.mxu1 %v3866_v3 }
 0x838   :  { %v3263_v21 = vpop.f32.mrb[16].mxu1 }
 0x839   :  { %v909_v22 = vpop.f32.mrb[17].mxu1 }
 0x83a   :  { %v3264_v24 = vpop.f32.mrb[18].mxu1 }
 0x83b   :  { %v912_v26 = vpop.f32.mrb[19].mxu1 }
 0x840   :  { %v3267_v29 = vpop.f32.mrb[20].mxu1 }
 0x841   :  { %v925_v30 = vpop.f32.mrb[21].mxu1 }
 0x842   :  { %940 = vrot.lane.b32.xlu0 %v925_v30, %s3861_s30  ;;  %v3268_v31 = vpop.f32.mrb[22].mxu1  ;;  %v3635_v30 = vld [vmem:[#allocation8 + $0x60] sm:$0xff]  }
 0x843   :  { %v928_v32 = vpop.f32.mrb[23].mxu1 }
 0x844   :  { %942 = vrot.lane.b32.xlu1 %v928_v32, %s3861_s30  ;;  %v3637_v32 = vld [vmem:[#allocation8 + $0x70] sm:$0xff]  }
 0x846   :  { %944 = vrot.lane.b32.xlu0 %v3267_v29, %s3861_s30  ;;  %v3634_v29 = vld [vmem:[#allocation8 + $0x58] sm:$0xff]  }
 0x848   :  { %946 = vrot.lane.b32.xlu1 %v3268_v31, %s3861_s30  ;;  %v3636_v31 = vld [vmem:[#allocation8 + $0x68] sm:$0xff]  }
 0x8b4   :  { %v941_v37 = vpop.permute.xlu0 %940 }
 0x8b5   :  { %v948_v39 = vadd.f32 %v941_v37, %v909_v22  ;;  %v3641_v37 = vld [vmem:[#allocation10 + $0x50] sm:$0xff]  }
 0x8b6   :  { %v943_v38 = vpop.permute.xlu1 %942 }
 0x8b7   :  { %v949_v40 = vadd.f32 %v943_v38, %v912_v26  ;;  %v3631_v26 = vld [vmem:[#allocation8 + $0x40] sm:$0xff]  }
 0x8b8   :  { %v945_v41 = vpop.permute.xlu0 %944 }
 0x8b9   :  { %v952_v42 = vpack.c.bf16 %v949_v40, %v948_v39  ;;  %v950_v44 = vadd.f32 %v3263_v21, %v945_v41  ;;  %v3642_v41 = vld [vmem:[#allocation10 + $0x58] sm:$0xff]  }
 0x8ba   :  { %v947_v43 = vpop.permute.xlu1 %946 }
 0x8bb   :  { %v951_v45 = vadd.f32 %v3264_v24, %v947_v43  ;;  %3285 = vmatprep.mubr.bf16.mxu0 %v952_v42  ;;  %v3643_v42 = vld [vmem:[#allocation10 + $0x60] sm:$0xff]   ;;  %v3644_v43 = vld [vmem:[#allocation10 + $0x68] sm:$0xff]  }
 0x8bd   :  { %v953_v46 = vpack.c.bf16 %v951_v45, %v950_v44 }
 0x8bf   :  { %3286 = vmatmul.mubr.bf16.vlgmr.msra.gmra.mrb[16].mxu0 %v953_v46 }
 0x8c0   :  { %3313 = vmatprep.mubr.msk.bf16.mxu0 %vm3867_vm5, %v3866_v3 }
 0x992   :  { %v3287_v51 = vpop.f32.mrb[16].mxu0 }
 0x993   :  { %v1067_v53 = vadd.f32 %v3287_v51, %v974_v49  ;;  %v1058_v54 = vpop.f32.mrb[17].mxu0  ;;  %v3645_v49 = vld [vmem:[#allocation10 + $0x70] sm:$0xff]   ;;  %v2858_v51 = vld [vmem:[%s4332_s11 + $0x1] ss:$0 sm:$0xff] }
 0x994   :  { %v1059_v56 = vadd.f32 %v1058_v54, %v972_v50  ;;  %v3288_v57 = vpop.f32.mrb[18].mxu0  ;;  %v3646_v50 = vld [vmem:[#allocation10 + $0x78] sm:$0xff]  }
 0x995   :  { %v1070_v58 = vadd.f32 %v3288_v57, %v975_v52  ;;  %v1061_v59 = vpop.f32.mrb[19].mxu0  ;;  %v1075_v61 = vmax.f32 %v1067_v53, 0.0 }
 0x996   :  { %v1062_v60 = vadd.f32 %v1061_v59, %v973_v55  ;;  %v1073_v63 = vmax.f32 %v1059_v56, 0.0 }
 0x997   :  { %v1076_v62 = vmax.f32 %v1070_v58, 0.0 }
 0x998   :  { %v1074_v0 = vmax.f32 %v1062_v60, 0.0 }
 0x999   :  { %v1078_v1 = vpack.c.bf16 %v1076_v62, %v1075_v61 }
 0x99a   :  { %v1077_v2 = vpack.c.bf16 %v1074_v0, %v1073_v63 }
 0x99c   :  { %3305 = vmatprep.mubr.bf16.mxu1 %v1077_v2 }
 0x99d   :  { %3306 = vmatmul.mubr.bf16.vlgmr.msra.gmra.mrb[24].mxu1 %v1078_v1 }
 0x99e   :  { %3333 = vmatprep.mubr.msk.bf16.mxu1 %vm3867_vm5, %v3866_v3  ;;  %3318 = vmatpush3.bf16.msra.mxu1 %v3631_v26 }
 0x99f   :  { %3319 = vmatprep.subr.bf16.mxu1 %v3866_v3 }
 0x9a2   :  { %3320 = vmatpush3.bf16.msra.mxu1 %v3632_v27 }
 0x9a3   :  { %3321 = vmatprep.subr.bf16.mxu1 %v3866_v3 }
 0x9a6   :  { %3322 = vmatpush3.bf16.msra.mxu1 %v3633_v28 }
 0x9a7   :  { %3323 = vmatprep.subr.bf16.mxu1 %v3866_v3 }
 0x9aa   :  { %3324 = vmatpush3.bf16.msra.mxu1 %v3634_v29  ;;  %v3657_v29 = vld [vmem:[#allocation7 + $0x90] sm:$0xff]  }
 0x9ab   :  { %3325 = vmatprep.subr.bf16.mxu1 %v3866_v3 }
 0x9ae   :  { %3326 = vmatpush3.bf16.msra.mxu1 %v3635_v30  ;;  %v3658_v30 = vld [vmem:[#allocation7 + $0x98] sm:$0xff]  }
 0x9af   :  { %3327 = vmatprep.subr.bf16.mxu1 %v3866_v3 }
 0x9b2   :  { %3328 = vmatpush3.bf16.msra.mxu1 %v3636_v31  ;;  %v3659_v31 = vld [vmem:[#allocation7 + $0xa0] sm:$0xff]  }
 0x9b3   :  { %3329 = vmatprep.subr.bf16.mxu1 %v3866_v3 }
 0x9b6   :  { %3330 = vmatpush3.bf16.msra.mxu1 %v3637_v32  ;;  %v3660_v32 = vld [vmem:[#allocation7 + $0xa8] sm:$0xff]  }
 0x9b7   :  { %3331 = vmatprep.subr.bf16.mxu1 %v3866_v3 }
 0x9ba   :  { %3332 = vmatpush3.bf16.msra.mxu1 %v3638_v33 }
 0xa70   :  { %v3307_v6 = vpop.f32.mrb[24].mxu1 }
 0xa71   :  { %v1195_v7 = vadd.f32 %v3307_v6, %v2847_v4  ;;  %v1186_v15 = vpop.f32.mrb[25].mxu1 }
 0xa72   :  { %v1187_v16 = vadd.f32 %v2847_v4, %v1186_v15  ;;  %v3308_v10 = vpop.f32.mrb[26].mxu1 }
 0xa73   :  { %v1198_v8 = vadd.f32 %v3308_v10, %v2847_v4  ;;  %v1189_v17 = vpop.f32.mrb[27].mxu1  ;;  %v1203_v19 = vmax.f32 %v1195_v7, 0.0  ;;  %v3647_v10 = vld [vmem:[#allocation2 + $0x80] sm:$0xff]  }
 0xa74   :  { %v1190_v18 = vadd.f32 %v2847_v4, %v1189_v17  ;;  %v1201_v21 = vmax.f32 %v1187_v16, 0.0  ;;  %v3651_v17 = vld [vmem:[#allocation2 + $0xa0] sm:$0xff]  }
 0xa75   :  { %v1204_v20 = vmax.f32 %v1198_v8, 0.0  ;;  %v3650_v8 = vld [vmem:[#allocation2 + $0x98] sm:$0xff]  }
 0xa76   :  { %v1202_v22 = vmax.f32 %v1190_v18, 0.0 }
 0xa77   :  { %v1206_v23 = vpack.c.bf16 %v1204_v20, %v1203_v19  ;;  %v3654_v19 = vld [vmem:[#allocation2 + $0xb8] sm:$0xff]  }
 0xa78   :  { %v1205_v24 = vpack.c.bf16 %v1202_v22, %v1201_v21  ;;  %v3655_v22 = vld [vmem:[#allocation7 + $0x80] sm:$0xff]  }
 0xa7a   :  { %3310 = vmatpush3.bf16.msra.mxu0 %v1205_v24 }
 0xa7b   :  { %3311 = vmatprep.subr.bf16.mxu0 %v3866_v3 }
 0xa7e   :  { %3312 = vmatpush3.bf16.msra.mxu0 %v1206_v23  ;;  %v3656_v23 = vld [vmem:[#allocation7 + $0x88] sm:$0xff]  }
 0xa7f   :  { %3337 = vmatprep.subr.bf16.mxu0 %v3866_v3 }
 0xa81   :  { %3314 = vmatmul.mubr.msk.bf16.vlgmr.msra.gmra.mrb[20].mxu0 %vm591_vm6, %v4082_v25 }
 0xa82   :  { %3353 = vmatprep.mubr.msk.bf16.mxu0 %vm3867_vm5, %v3866_v3  ;;  %3338 = vmatpush3.bf16.msra.mxu0 %v3639_v34 }
 0xa83   :  { %3339 = vmatprep.subr.bf16.mxu0 %v3866_v3 }
 0xa86   :  { %3340 = vmatpush3.bf16.msra.mxu0 %v3640_v35 }
 0xa87   :  { %3341 = vmatprep.subr.bf16.mxu0 %v3866_v3 }
 0xa8a   :  { %3342 = vmatpush3.bf16.msra.mxu0 %v3641_v37 }
 0xa8b   :  { %3343 = vmatprep.subr.bf16.mxu0 %v3866_v3 }
 0xa8e   :  { %3344 = vmatpush3.bf16.msra.mxu0 %v3642_v41 }
 0xa8f   :  { %3345 = vmatprep.subr.bf16.mxu0 %v3866_v3 }
 0xa92   :  { %3346 = vmatpush3.bf16.msra.mxu0 %v3643_v42 }
 0xa93   :  { %3347 = vmatprep.subr.bf16.mxu0 %v3866_v3 }
 0xa96   :  { %3348 = vmatpush3.bf16.msra.mxu0 %v3644_v43  ;;  %v3661_v43 = vld [vmem:[#allocation7 + $0xb0] sm:$0xff]  }
 0xa97   :  { %3349 = vmatprep.subr.bf16.mxu0 %v3866_v3 }
 0xa9a   :  { %3350 = vmatpush3.bf16.msra.mxu0 %v3645_v49 }
 0xa9b   :  { %3351 = vmatprep.subr.bf16.mxu0 %v3866_v3 }
 0xa9e   :  { %3352 = vmatpush3.bf16.msra.mxu0 %v3646_v50 }
 0xa9f   :  { %3367 = vmatprep.subr.bf16.mxu0 %v3647_v10 }
 0xb54   :  { %v1241_v36 = vpop.f32.mrb[20].mxu0 }
 0xb55   :  { %1248 = vrot.lane.b32.xlu0 %v1241_v36, %s3861_s30  ;;  %v3315_v38 = vpop.f32.mrb[21].mxu0 }
 0xb56   :  { %v1244_v39 = vpop.f32.mrb[22].mxu0 }
 0xb57   :  { %1250 = vrot.lane.b32.xlu1 %v1244_v39, %s3861_s30  ;;  %v3316_v40 = vpop.f32.mrb[23].mxu0 }
 0xbc7   :  { %v1249_v44 = vpop.permute.xlu0 %1248 }
 0xbc8   :  { %v1252_v46 = vadd.f32 %v1249_v44, %v4116_v9  ;;  %v3662_v44 = vld [vmem:[#allocation7 + $0xb8] sm:$0xff]  }
 0xbc9   :  { %v1251_v45 = vpop.permute.xlu1 %1250 }
 0xbca   :  { %v1253_v47 = vadd.f32 %v1251_v45, %v4119_v11  ;;  %v1590_v45 = vld [vmem:[#allocation5 + $0x50] sm:$0xff] }
 0xbcc   :  { %v1254_v48 = vpack.c.bf16 %v1253_v47, %v1252_v46  ;;  %v1588_v46 = vld [vmem:[#allocation5 + $0x40] sm:$0xff] }
 0xbce   :  { %3334 = vmatmul.mubr.bf16.vlgmr.msra.gmra.mrb[28].mxu1 %v1254_v48  ;;  %v1591_v48 = vld [vmem:[#allocation5 + $0x58] sm:$0xff] }
 0xbcf   :  { %3359 = vmatprep.mubr.msk.bf16.mxu1 %vm245_vm4, %v4031_v5  ;;  %v2868_v5 = vld [vmem:[%s4334_s13 + $0x1] ss:$0 sm:$0xff] }
 0xca1   :  { %v1362_v52 = vpop.f32.mrb[28].mxu1 }
 0xca2   :  { %v1363_v53 = vadd.f32 %v2858_v51, %v1362_v52  ;;  %v3335_v54 = vpop.f32.mrb[29].mxu1 }
 0xca3   :  { %v1365_v55 = vpop.f32.mrb[30].mxu1 }
 0xca4   :  { %v1366_v56 = vadd.f32 %v2858_v51, %v1365_v55  ;;  %v3336_v57 = vpop.f32.mrb[31].mxu1  ;;  %v1369_v58 = vmax.f32 %v1363_v53, 0.0  ;;  %v1589_v51 = vld [vmem:[#allocation5 + $0x48] sm:$0xff] }
 0xca6   :  { %v1370_v59 = vmax.f32 %v1366_v56, 0.0 }
 0xca8   :  { %v1371_v60 = vpack.c.bf16 %v1370_v59, %v1369_v58 }
 0xcaa   :  { %3354 = vmatmul.mubr.bf16.vlgmr.msra.gmra.mrb[24].mxu0 %v1371_v60 }
 0xcab   :  { %3368 = vmatpush3.bf16.msra.mxu0 %v3647_v10 }
 0xd7d   :  { %v1479_v61 = vpop.f32.mrb[24].mxu0 }
 0xd7e   :  { %v1480_v62 = vadd.f32 %v2868_v5, %v1479_v61  ;;  %v3355_v63 = vpop.f32.mrb[25].mxu0 }
 0xd7f   :  { %v1482_v0 = vpop.f32.mrb[26].mxu0 }
 0xd80   :  { %v1486_v1 = vmax.f32 %v1480_v62, 0.0  ;;  %v1483_v2 = vadd.f32 %v2868_v5, %v1482_v0  ;;  %v3356_v4 = vpop.f32.mrb[27].mxu0  ;;  %v2890_v62 = vld [vmem:[%s4330_s9 + $0x2] ss:$0 sm:$0xff] }
 0xd82   :  { %v1487_v6 = vmax.f32 %v1483_v2, 0.0  ;;  %v4175_v7 = vadd.f32 %v1486_v1, %v4116_v9  ;;  %v3648_v9 = vld [vmem:[#allocation2 + $0x88] sm:$0xff]  }
 0xd83   :  { %3369 = vmatprep.subr.bf16.mxu0 %v3648_v9 }
 0xd84   :  { %v4178_v15 = vadd.f32 %v1487_v6, %v4119_v11  ;;  %v3649_v11 = vld [vmem:[#allocation2 + $0x90] sm:$0xff]   ;;  %3370 = vmatpush3.bf16.msra.mxu0 %v3648_v9 }
 0xd85   :  { %3371 = vmatprep.subr.bf16.mxu0 %v3649_v11 }
 0xd86   :  { %v1490_v16 = vpack.c.bf16 %v4178_v15, %v4175_v7 }
 0xd88   :  { %3357 = vmatprep.subr.bf16.mxu1 %v1490_v16  ;;  %3372 = vmatpush3.bf16.msra.mxu0 %v3649_v11 }
 0xd89   :  { %3358 = vmatpush3.bf16.msra.mxu1 %v1490_v16  ;;  %3373 = vmatprep.subr.bf16.mxu0 %v3650_v8 }
 0xd8a   :  { %3387 = vmatprep.subr.bf16.mxu1 %v3655_v22 }
 0xd8c   :  { %3360 = vmatmul.mubr.msk.bf16.vlgmr.msra.gmra.mrb[32].mxu1 %vm245_vm4, %v4047_v12  ;;  %3374 = vmatpush3.bf16.msra.mxu0 %v3650_v8  ;;  %v3652_v12 = vld [vmem:[#allocation2 + $0xa8] sm:$0xff]  }
 0xd8d   :  { %3363 = vmatprep.mubr.msk.bf16.mxu1 %vm245_vm4, %v4052_v13  ;;  %3375 = vmatprep.subr.bf16.mxu0 %v3651_v17  ;;  %v3653_v13 = vld [vmem:[#allocation2 + $0xb0] sm:$0xff]  }
 0xd8e   :  { %3388 = vmatpush3.bf16.msra.mxu1 %v3655_v22  ;;  %v3669_v22 = vld [vmem:[#allocation8 + $0xb0] sm:$0xff]  }
 0xd8f   :  { %3389 = vmatprep.subr.bf16.mxu1 %v3656_v23 }
 0xd90   :  { %3376 = vmatpush3.bf16.msra.mxu0 %v3651_v17 }
 0xd91   :  { %3377 = vmatprep.subr.bf16.mxu0 %v3652_v12 }
 0xd92   :  { %3390 = vmatpush3.bf16.msra.mxu1 %v3656_v23  ;;  %v3670_v23 = vld [vmem:[#allocation8 + $0xb8] sm:$0xff]  }
 0xd93   :  { %3391 = vmatprep.subr.bf16.mxu1 %v3657_v29 }
 0xd94   :  { %3364 = vmatmul.mubr.msk.bf16.gmra.mrb[36].mxu1 %vm245_vm4, %v4061_v14  ;;  %3378 = vmatpush3.bf16.msra.mxu0 %v3652_v12 }
 0xd95   :  { %3379 = vmatprep.subr.bf16.mxu0 %v3653_v13 }
 0xd96   :  { %3392 = vmatpush3.bf16.msra.mxu1 %v3657_v29 }
 0xd97   :  { %3393 = vmatprep.subr.bf16.mxu1 %v3658_v30 }
 0xd98   :  { %3380 = vmatpush3.bf16.msra.mxu0 %v3653_v13 }
 0xd99   :  { %3381 = vmatprep.subr.bf16.mxu0 %v3654_v19 }
 0xd9a   :  { %3394 = vmatpush3.bf16.msra.mxu1 %v3658_v30 }
 0xd9b   :  { %3395 = vmatprep.subr.bf16.mxu1 %v3659_v31 }
 0xd9c   :  { %3382 = vmatpush3.bf16.msra.mxu0 %v3654_v19  ;;  %v3665_v19 = vld [vmem:[#allocation8 + $0x90] sm:$0xff]  }
 0xd9d   :  { %3407 = vmatprep.subr.bf16.mxu0 %v3866_v3 }
 0xd9e   :  { %3396 = vmatpush3.bf16.msra.mxu1 %v3659_v31 }
 0xd9f   :  { %3397 = vmatprep.subr.bf16.mxu1 %v3660_v32 }
 0xda2   :  { %3398 = vmatpush3.bf16.msra.mxu1 %v3660_v32  ;;  %v3674_v32 = vld [vmem:[#allocation10 + $0x98] sm:$0xff]  }
 0xda3   :  { %3399 = vmatprep.subr.bf16.mxu1 %v3661_v43 }
 0xda6   :  { %3400 = vmatpush3.bf16.msra.mxu1 %v3661_v43  ;;  %v2901_v43 = vld [vmem:[%s4332_s11 + $0x2] ss:$0 sm:$0xff] }
 0xda7   :  { %3401 = vmatprep.subr.bf16.mxu1 %v3662_v44 }
 0xdaa   :  { %3402 = vmatpush3.bf16.msra.mxu1 %v3662_v44 }
 0xdab   :  { %3415 = vmatprep.subr.bf16.mxu1 %v3866_v3 }
 0xe5f   :  { %v3361_v14 = vpop.f32.mrb[32].mxu1 }
 0xe60   :  { %v1525_v18 = vpop.f32.mrb[33].mxu1 }
 0xe61   :  { %v3362_v20 = vpop.f32.mrb[34].mxu1 }
 0xe62   :  { %v1528_v21 = vpop.f32.mrb[35].mxu1 }
 0xe67   :  { %v3365_v24 = vpop.f32.mrb[36].mxu1 }
 0xe68   :  { %v1541_v26 = vpop.f32.mrb[37].mxu1 }
 0xe69   :  { %1556 = vrot.lane.b32.xlu0 %v1541_v26, %s3861_s30  ;;  %v3366_v27 = vpop.f32.mrb[38].mxu1  ;;  %v3672_v26 = vld [vmem:[#allocation10 + $0x88] sm:$0xff]  }
 0xe6a   :  { %v1544_v28 = vpop.f32.mrb[39].mxu1 }
 0xe6b   :  { %1558 = vrot.lane.b32.xlu1 %v1544_v28, %s3861_s30  ;;  %v3673_v28 = vld [vmem:[#allocation10 + $0x90] sm:$0xff]  }
 0xe6d   :  { %1560 = vrot.lane.b32.xlu0 %v3365_v24, %s3861_s30  ;;  %v3671_v24 = vld [vmem:[#allocation10 + $0x80] sm:$0xff]  }
 0xe6f   :  { %1562 = vrot.lane.b32.xlu1 %v3366_v27, %s3861_s30 }
 0xedb   :  { %v1557_v33 = vpop.permute.xlu0 %1556 }
 0xedc   :  { %v1564_v35 = vadd.f32 %v1557_v33, %v1525_v18  ;;  %v3664_v18 = vld [vmem:[#allocation8 + $0x88] sm:$0xff]   ;;  %v3675_v33 = vld [vmem:[#allocation10 + $0xa0] sm:$0xff]  }
 0xedd   :  { %v1559_v34 = vpop.permute.xlu1 %1558 }
 0xede   :  { %v1565_v36 = vadd.f32 %v1559_v34, %v1528_v21  ;;  %v3667_v21 = vld [vmem:[#allocation8 + $0xa0] sm:$0xff]   ;;  %v3676_v34 = vld [vmem:[#allocation10 + $0xa8] sm:$0xff]  }
 0xedf   :  { %v1561_v37 = vpop.permute.xlu0 %1560 }
 0xee0   :  { %v1568_v38 = vpack.c.bf16 %v1565_v36, %v1564_v35  ;;  %v1566_v40 = vadd.f32 %v3361_v14, %v1561_v37  ;;  %v3663_v14 = vld [vmem:[#allocation8 + $0x80] sm:$0xff]  }
 0xee1   :  { %v1563_v39 = vpop.permute.xlu1 %1562 }
 0xee2   :  { %v1567_v41 = vadd.f32 %v3362_v20, %v1563_v39  ;;  %3383 = vmatprep.mubr.bf16.mxu0 %v1568_v38  ;;  %v3666_v20 = vld [vmem:[#allocation8 + $0x98] sm:$0xff]  }
 0xee4   :  { %v1569_v42 = vpack.c.bf16 %v1567_v41, %v1566_v40  ;;  %v3711_v40 = vld [vmem:[%s4324_s3] sm:$0xff]   ;;  %v3677_v41 = vld [vmem:[#allocation10 + $0xb0] sm:$0xff]  }
 0xee6   :  { %3384 = vmatmul.mubr.bf16.vlgmr.msra.gmra.mrb[28].mxu0 %v1569_v42  ;;  %v3678_v42 = vld [vmem:[#allocation10 + $0xb8] sm:$0xff]  }
 0xee7   :  { %3411 = vmatprep.mubr.msk.bf16.mxu0 %vm3867_vm5, %v3866_v3 }
 0xfb9   :  { %v3385_v47 = vpop.f32.mrb[28].mxu0 }
 0xfba   :  { %v1683_v49 = vadd.f32 %v3385_v47, %v1590_v45  ;;  %v1674_v50 = vpop.f32.mrb[29].mxu0 }
 0xfbb   :  { %v1675_v52 = vadd.f32 %v1674_v50, %v1588_v46  ;;  %v3386_v53 = vpop.f32.mrb[30].mxu0 }
 0xfbc   :  { %v1686_v54 = vadd.f32 %v3386_v53, %v1591_v48  ;;  %v1677_v55 = vpop.f32.mrb[31].mxu0  ;;  %v1691_v57 = vmax.f32 %v1683_v49, 0.0  ;;  %v2911_v53 = vld [vmem:[%s4334_s13 + $0x2] ss:$0 sm:$0xff] }
 0xfbd   :  { %v1678_v56 = vadd.f32 %v1677_v55, %v1589_v51  ;;  %v1689_v59 = vmax.f32 %v1675_v52, 0.0 }
 0xfbe   :  { %v1692_v58 = vmax.f32 %v1686_v54, 0.0 }
 0xfbf   :  { %v1690_v60 = vmax.f32 %v1678_v56, 0.0 }
 0xfc0   :  { %v1694_v5 = vpack.c.bf16 %v1692_v58, %v1691_v57 }
 0xfc1   :  { %v1693_v61 = vpack.c.bf16 %v1690_v60, %v1689_v59 }
 0xfc3   :  { %3403 = vmatprep.mubr.bf16.mxu1 %v1693_v61 }
 0xfc4   :  { %3404 = vmatmul.mubr.bf16.vlgmr.msra.gmra.mrb[40].mxu1 %v1694_v5 }
 0xfc5   :  { %3431 = vmatprep.mubr.msk.bf16.mxu1 %vm3867_vm5, %v3866_v3  ;;  %3416 = vmatpush3.bf16.msra.mxu1 %v3663_v14  ;;  %v3687_v14 = vld [vmem:[#allocation7 + $0xc0] sm:$0xff]  }
 0xfc6   :  { %3417 = vmatprep.subr.bf16.mxu1 %v3866_v3 }
 0xfc9   :  { %3418 = vmatpush3.bf16.msra.mxu1 %v3664_v18  ;;  %v3688_v18 = vld [vmem:[#allocation7 + $0xc8] sm:$0xff]  }
 0xfca   :  { %3419 = vmatprep.subr.bf16.mxu1 %v3866_v3 }
 0xfcd   :  { %3420 = vmatpush3.bf16.msra.mxu1 %v3665_v19 }
 0xfce   :  { %3421 = vmatprep.subr.bf16.mxu1 %v3866_v3 }
 0xfd1   :  { %3422 = vmatpush3.bf16.msra.mxu1 %v3666_v20 }
 0xfd2   :  { %3423 = vmatprep.subr.bf16.mxu1 %v3866_v3 }
 0xfd5   :  { %3424 = vmatpush3.bf16.msra.mxu1 %v3667_v21 }
 0xfd6   :  { %3425 = vmatprep.subr.bf16.mxu1 %v3866_v3 }
0x1097   :  { %v3405_v63 = vpop.f32.mrb[40].mxu1 }
0x1098   :  { %v1811_v0 = vadd.f32 %v3405_v63, %v2890_v62  ;;  %v1802_v1 = vpop.f32.mrb[41].mxu1 }
0x1099   :  { %v1803_v2 = vadd.f32 %v2890_v62, %v1802_v1  ;;  %v3406_v4 = vpop.f32.mrb[42].mxu1  ;;  %v3713_v1 = vld [vmem:[%s4324_s3 + $0x10] sm:$0xff]  }
0x109a   :  { %v1814_v6 = vadd.f32 %v3406_v4, %v2890_v62  ;;  %v1805_v16 = vpop.f32.mrb[43].mxu1  ;;  %v1819_v9 = vmax.f32 %v1811_v0, 0.0  ;;  %v3712_v0 = vld [vmem:[%s4324_s3 + $0x8] sm:$0xff]   ;;  %v3681_v4 = vld [vmem:[#allocation2 + $0xd0] sm:$0xff]  }
0x109b   :  { %v1806_v10 = vadd.f32 %v2890_v62, %v1805_v16  ;;  %v1817_v8 = vmax.f32 %v1803_v2, 0.0  ;;  %v3680_v2 = vld [vmem:[#allocation2 + $0xc8] sm:$0xff]   ;;  %v3683_v16 = vld [vmem:[#allocation2 + $0xe0] sm:$0xff]  }
0x109c   :  { %v1820_v11 = vmax.f32 %v1814_v6, 0.0  ;;  %v3682_v6 = vld [vmem:[#allocation2 + $0xd8] sm:$0xff]  }
0x109d   :  { %v1818_v17 = vmax.f32 %v1806_v10, 0.0  ;;  %v3684_v10 = vld [vmem:[#allocation2 + $0xe8] sm:$0xff]  }
0x109e   :  { %v1822_v12 = vpack.c.bf16 %v1820_v11, %v1819_v9  ;;  %v3685_v9 = vld [vmem:[#allocation2 + $0xf0] sm:$0xff]  }
0x109f   :  { %v1821_v13 = vpack.c.bf16 %v1818_v17, %v1817_v8  ;;  %v3686_v17 = vld [vmem:[#allocation2 + $0xf8] sm:$0xff]  }
0x10a1   :  { %3408 = vmatpush3.bf16.msra.mxu0 %v1821_v13 }
0x10a2   :  { %3409 = vmatprep.subr.bf16.mxu0 %v3866_v3 }
0x10a5   :  { %3410 = vmatpush3.bf16.msra.mxu0 %v1822_v12 }
0x10a6   :  { %3435 = vmatprep.subr.bf16.mxu0 %v3866_v3 }
0x10a8   :  { %3412 = vmatmul.mubr.msk.bf16.vlgmr.msra.gmra.mrb[32].mxu0 %vm591_vm6, %v4082_v25  ;;  %v3668_v25 = vld [vmem:[#allocation8 + $0xa8] sm:$0xff]  }
0x10a9   :  { %3451 = vmatprep.mubr.msk.bf16.mxu0 %vm3867_vm5, %v3866_v3  ;;  %3426 = vmatpush3.bf16.msra.mxu1 %v3668_v25 }
0x10aa   :  { %3427 = vmatprep.subr.bf16.mxu1 %v3866_v3  ;;  %3436 = vmatpush3.bf16.msra.mxu0 %v3671_v24  ;;  %v3691_v24 = vld [vmem:[#allocation7 + $0xe0] sm:$0xff]  }
0x10ab   :  { %3437 = vmatprep.subr.bf16.mxu0 %v3866_v3 }
0x10ad   :  { %3428 = vmatpush3.bf16.msra.mxu1 %v3669_v22  ;;  %v3689_v22 = vld [vmem:[#allocation7 + $0xd0] sm:$0xff]  }
0x10ae   :  { %3429 = vmatprep.subr.bf16.mxu1 %v3866_v3  ;;  %3438 = vmatpush3.bf16.msra.mxu0 %v3672_v26  ;;  %v3692_v26 = vld [vmem:[#allocation7 + $0xe8] sm:$0xff]  }
0x10af   :  { %3439 = vmatprep.subr.bf16.mxu0 %v3866_v3 }
0x10b1   :  { %3430 = vmatpush3.bf16.msra.mxu1 %v3670_v23  ;;  %v3690_v23 = vld [vmem:[#allocation7 + $0xd8] sm:$0xff]  }
0x10b2   :  { %3440 = vmatpush3.bf16.msra.mxu0 %v3673_v28 }
0x10b3   :  { %3441 = vmatprep.subr.bf16.mxu0 %v3866_v3 }
0x10b6   :  { %3442 = vmatpush3.bf16.msra.mxu0 %v3674_v32 }
0x10b7   :  { %3443 = vmatprep.subr.bf16.mxu0 %v3866_v3 }
0x10ba   :  { %3444 = vmatpush3.bf16.msra.mxu0 %v3675_v33 }
0x10bb   :  { %3445 = vmatprep.subr.bf16.mxu0 %v3866_v3 }
0x10be   :  { %3446 = vmatpush3.bf16.msra.mxu0 %v3676_v34 }
0x10bf   :  { %3447 = vmatprep.subr.bf16.mxu0 %v3866_v3 }
0x10c2   :  { %3448 = vmatpush3.bf16.msra.mxu0 %v3677_v41 }
0x10c3   :  { %3449 = vmatprep.subr.bf16.mxu0 %v3866_v3 }
0x10c6   :  { %3450 = vmatpush3.bf16.msra.mxu0 %v3678_v42  ;;  %v2207_v42 = vld [vmem:[#allocation5 + $0x78] sm:$0xff] }
0x117b   :  { %v1857_v27 = vpop.f32.mrb[32].mxu0 }
0x117c   :  { %1864 = vrot.lane.b32.xlu0 %v1857_v27, %s3861_s30  ;;  %v3413_v29 = vpop.f32.mrb[33].mxu0 }
0x117d   :  { %v1860_v30 = vpop.f32.mrb[34].mxu0 }
0x117e   :  { %1866 = vrot.lane.b32.xlu1 %v1860_v30, %s3861_s30  ;;  %v3414_v31 = vpop.f32.mrb[35].mxu0 }
0x11ee   :  { %v1865_v35 = vpop.permute.xlu0 %1864 }
0x11ef   :  { %v1868_v37 = vadd.f32 %v1865_v35, %v4175_v7 }
0x11f0   :  { %v1867_v36 = vpop.permute.xlu1 %1866 }
0x11f1   :  { %v1869_v38 = vadd.f32 %v1867_v36, %v4178_v15 }
0x11f3   :  { %v1870_v39 = vpack.c.bf16 %v1869_v38, %v1868_v37  ;;  %v3693_v37 = vld [vmem:[#allocation7 + $0xf0] sm:$0xff]   ;;  %v3694_v38 = vld [vmem:[#allocation7 + $0xf8] sm:$0xff]  }
0x11f5   :  { %3432 = vmatmul.mubr.bf16.vlgmr.msra.gmra.mrb[44].mxu1 %v1870_v39  ;;  %v2206_v39 = vld [vmem:[#allocation5 + $0x70] sm:$0xff] }
0x11f6   :  { %3457 = vmatprep.mubr.msk.bf16.mxu1 %vm245_vm4, %v3711_v40  ;;  %v2204_v40 = vld [vmem:[#allocation5 + $0x60] sm:$0xff] }
0x12c8   :  { %v1978_v44 = vpop.f32.mrb[44].mxu1 }
0x12c9   :  { %v1979_v45 = vadd.f32 %v2901_v43, %v1978_v44  ;;  %v3433_v46 = vpop.f32.mrb[45].mxu1 }
0x12ca   :  { %v1981_v47 = vpop.f32.mrb[46].mxu1 }
0x12cb   :  { %v1982_v48 = vadd.f32 %v2901_v43, %v1981_v47  ;;  %v3434_v49 = vpop.f32.mrb[47].mxu1  ;;  %v1985_v50 = vmax.f32 %v1979_v45, 0.0  ;;  %v2205_v45 = vld [vmem:[#allocation5 + $0x68] sm:$0xff] }
0x12cd   :  { %v1986_v51 = vmax.f32 %v1982_v48, 0.0 }
0x12cf   :  { %v1987_v52 = vpack.c.bf16 %v1986_v51, %v1985_v50 }
0x12d1   :  { %3452 = vmatmul.mubr.bf16.vlgmr.msra.gmra.mrb[36].mxu0 %v1987_v52 }
0x13a4   :  { %v2095_v54 = vpop.f32.mrb[36].mxu0 }
0x13a5   :  { %v2096_v55 = vadd.f32 %v2911_v53, %v2095_v54  ;;  %v3453_v56 = vpop.f32.mrb[37].mxu0 }
0x13a6   :  { %v2098_v57 = vpop.f32.mrb[38].mxu0 }
0x13a7   :  { %v2102_v58 = vmax.f32 %v2096_v55, 0.0  ;;  %v2099_v59 = vadd.f32 %v2911_v53, %v2098_v57  ;;  %v3454_v60 = vpop.f32.mrb[39].mxu0  ;;  %v2933_v57 = vld [vmem:[%s4330_s9 + $0x3] ss:$0 sm:$0xff] }
0x13a9   :  { %v2103_v5 = vmax.f32 %v2099_v59, 0.0  ;;  %v4236_v61 = vadd.f32 %v2102_v58, %v4175_v7  ;;  %v3714_v7 = vld [vmem:[%s4324_s3 + $0x18] sm:$0xff]  }
0x13ab   :  { %v4239_v62 = vadd.f32 %v2103_v5, %v4178_v15  ;;  %v3679_v15 = vld [vmem:[#allocation2 + $0xc0] sm:$0xff]  }
0x13ac   :  { %3465 = vmatprep.subr.bf16.mxu0 %v3679_v15 }
0x13ad   :  { %v2106_v63 = vpack.c.bf16 %v4239_v62, %v4236_v61  ;;  %3466 = vmatpush3.bf16.msra.mxu0 %v3679_v15 }
0x13ae   :  { %3467 = vmatprep.subr.bf16.mxu0 %v3680_v2 }
0x13af   :  { %3455 = vmatprep.subr.bf16.mxu1 %v2106_v63 }
0x13b0   :  { %3456 = vmatpush3.bf16.msra.mxu1 %v2106_v63 }
0x13b1   :  { %3468 = vmatpush3.bf16.msra.mxu0 %v3680_v2  ;;  %3485 = vmatprep.subr.bf16.mxu1 %v3687_v14 }
0x13b2   :  { %3469 = vmatprep.subr.bf16.mxu0 %v3681_v4 }
0x13b3   :  { %3458 = vmatmul.mubr.msk.bf16.vlgmr.msra.gmra.mrb[48].mxu1 %vm245_vm4, %v3712_v0 }
0x13b4   :  { %3461 = vmatprep.mubr.msk.bf16.mxu1 %vm245_vm4, %v3713_v1  ;;  %3486 = vmatpush3.bf16.msra.mxu1 %v3687_v14  ;;  %v3700_v14 = vld [vmem:[#allocation8 + $0xe8] sm:$0xff]  }
0x13b5   :  { %3470 = vmatpush3.bf16.msra.mxu0 %v3681_v4  ;;  %3487 = vmatprep.subr.bf16.mxu1 %v3688_v18 }
0x13b6   :  { %3471 = vmatprep.subr.bf16.mxu0 %v3682_v6 }
0x13b8   :  { %3488 = vmatpush3.bf16.msra.mxu1 %v3688_v18  ;;  %v3701_v18 = vld [vmem:[#allocation8 + $0xf0] sm:$0xff]  }
0x13b9   :  { %3472 = vmatpush3.bf16.msra.mxu0 %v3682_v6  ;;  %3489 = vmatprep.subr.bf16.mxu1 %v3689_v22 }
0x13ba   :  { %3473 = vmatprep.subr.bf16.mxu0 %v3683_v16 }
0x13bb   :  { %3462 = vmatmul.mubr.msk.bf16.gmra.mrb[52].mxu1 %vm245_vm4, %v3714_v7 }
0x13bc   :  { %3490 = vmatpush3.bf16.msra.mxu1 %v3689_v22  ;;  %v3705_v22 = vld [vmem:[#allocation10 + $0xd0] sm:$0xff]  }
0x13bd   :  { %3474 = vmatpush3.bf16.msra.mxu0 %v3683_v16  ;;  %3491 = vmatprep.subr.bf16.mxu1 %v3690_v23 }
0x13be   :  { %3475 = vmatprep.subr.bf16.mxu0 %v3684_v10 }
0x13c0   :  { %3492 = vmatpush3.bf16.msra.mxu1 %v3690_v23 }
0x13c1   :  { %3476 = vmatpush3.bf16.msra.mxu0 %v3684_v10  ;;  %3493 = vmatprep.subr.bf16.mxu1 %v3691_v24 }
0x13c2   :  { %3477 = vmatprep.subr.bf16.mxu0 %v3685_v9 }
0x13c4   :  { %3494 = vmatpush3.bf16.msra.mxu1 %v3691_v24 }
0x13c5   :  { %3478 = vmatpush3.bf16.msra.mxu0 %v3685_v9  ;;  %3495 = vmatprep.subr.bf16.mxu1 %v3692_v26  ;;  %v3715_v9 = vld [vmem:[%s4325_s4] sm:$0xff]  }
0x13c6   :  { %3479 = vmatprep.subr.bf16.mxu0 %v3686_v17 }
0x13c8   :  { %3496 = vmatpush3.bf16.msra.mxu1 %v3692_v26 }
0x13c9   :  { %3480 = vmatpush3.bf16.msra.mxu0 %v3686_v17  ;;  %3497 = vmatprep.subr.bf16.mxu1 %v3693_v37  ;;  %v3697_v17 = vld [vmem:[#allocation8 + $0xd0] sm:$0xff]  }
0x13ca   :  { %3505 = vmatprep.subr.bf16.mxu0 %v3866_v3 }
0x13cc   :  { %3498 = vmatpush3.bf16.msra.mxu1 %v3693_v37  ;;  %v2944_v37 = vld [vmem:[%s4332_s11 + $0x3] ss:$0 sm:$0xff] }
0x13cd   :  { %3499 = vmatprep.subr.bf16.mxu1 %v3694_v38 }
0x13d0   :  { %3500 = vmatpush3.bf16.msra.mxu1 %v3694_v38 }
0x13d1   :  { %3513 = vmatprep.subr.bf16.mxu1 %v3866_v3 }
0x1486   :  { %v3459_v11 = vpop.f32.mrb[48].mxu1 }
0x1487   :  { %v2141_v8 = vpop.f32.mrb[49].mxu1 }
0x1488   :  { %v3460_v12 = vpop.f32.mrb[50].mxu1 }
0x1489   :  { %v2144_v13 = vpop.f32.mrb[51].mxu1 }
0x148e   :  { %v3463_v19 = vpop.f32.mrb[52].mxu1 }
0x148f   :  { %v2157_v20 = vpop.f32.mrb[53].mxu1 }
0x1490   :  { %2172 = vrot.lane.b32.xlu0 %v2157_v20, %s3861_s30  ;;  %v3464_v21 = vpop.f32.mrb[54].mxu1  ;;  %v3703_v20 = vld [vmem:[#allocation10 + $0xc0] sm:$0xff]  }
0x1491   :  { %v2160_v25 = vpop.f32.mrb[55].mxu1 }
0x1492   :  { %2174 = vrot.lane.b32.xlu1 %v2160_v25, %s3861_s30 }
0x1494   :  { %2176 = vrot.lane.b32.xlu0 %v3463_v19, %s3861_s30  ;;  %v3702_v19 = vld [vmem:[#allocation8 + $0xf8] sm:$0xff]  }
0x1496   :  { %2178 = vrot.lane.b32.xlu1 %v3464_v21, %s3861_s30  ;;  %v3704_v21 = vld [vmem:[#allocation10 + $0xc8] sm:$0xff]  }
0x1502   :  { %v2173_v27 = vpop.permute.xlu0 %2172 }
0x1503   :  { %v2180_v29 = vadd.f32 %v2173_v27, %v2141_v8  ;;  %v3696_v8 = vld [vmem:[#allocation8 + $0xc8] sm:$0xff]   ;;  %v3706_v27 = vld [vmem:[#allocation10 + $0xd8] sm:$0xff]  }
0x1504   :  { %v2175_v28 = vpop.permute.xlu1 %2174 }
0x1505   :  { %v2181_v30 = vadd.f32 %v2175_v28, %v2144_v13  ;;  %v3699_v13 = vld [vmem:[#allocation8 + $0xe0] sm:$0xff]  }
0x1506   :  { %v2177_v31 = vpop.permute.xlu0 %2176  ;;  %v3707_v28 = vld [vmem:[#allocation10 + $0xe0] sm:$0xff]  }
0x1507   :  { %v2184_v32 = vpack.c.bf16 %v2181_v30, %v2180_v29  ;;  %v2182_v34 = vadd.f32 %v3459_v11, %v2177_v31  ;;  %v3695_v11 = vld [vmem:[#allocation8 + $0xc0] sm:$0xff]   ;;  %v3708_v29 = vld [vmem:[#allocation10 + $0xe8] sm:$0xff]  }
0x1508   :  { %v2179_v33 = vpop.permute.xlu1 %2178 }
0x1509   :  { %v2183_v35 = vadd.f32 %v3460_v12, %v2179_v33  ;;  %3481 = vmatprep.mubr.bf16.mxu0 %v2184_v32  ;;  %v3698_v12 = vld [vmem:[#allocation8 + $0xd8] sm:$0xff]  }
0x150b   :  { %v2185_v36 = vpack.c.bf16 %v2183_v35, %v2182_v34  ;;  %v3709_v35 = vld [vmem:[#allocation10 + $0xf0] sm:$0xff]  }
0x150d   :  { %3482 = vmatmul.mubr.bf16.vlgmr.msra.gmra.mrb[40].mxu0 %v2185_v36  ;;  %v3710_v36 = vld [vmem:[#allocation10 + $0xf8] sm:$0xff]  }
0x150e   :  { %3509 = vmatprep.mubr.msk.bf16.mxu0 %vm3867_vm5, %v3866_v3 }
0x15e0   :  { %v3483_v41 = vpop.f32.mrb[40].mxu0 }
0x15e1   :  { %v2299_v43 = vadd.f32 %v3483_v41, %v2206_v39  ;;  %v2290_v44 = vpop.f32.mrb[41].mxu0 }
0x15e2   :  { %v2291_v46 = vadd.f32 %v2290_v44, %v2204_v40  ;;  %v3484_v47 = vpop.f32.mrb[42].mxu0 }
0x15e3   :  { %v2302_v48 = vadd.f32 %v3484_v47, %v2207_v42  ;;  %v2293_v49 = vpop.f32.mrb[43].mxu0  ;;  %v2307_v51 = vmax.f32 %v2299_v43, 0.0 }
0x15e4   :  { %v2294_v50 = vadd.f32 %v2293_v49, %v2205_v45  ;;  %v2305_v53 = vmax.f32 %v2291_v46, 0.0 }
0x15e5   :  { %v2308_v52 = vmax.f32 %v2302_v48, 0.0 }
0x15e6   :  { %v2306_v54 = vmax.f32 %v2294_v50, 0.0 }
0x15e7   :  { %v2310_v55 = vpack.c.bf16 %v2308_v52, %v2307_v51 }
0x15e8   :  { %v2309_v56 = vpack.c.bf16 %v2306_v54, %v2305_v53 }
0x15ea   :  { %3501 = vmatprep.mubr.bf16.mxu1 %v2309_v56 }
0x15eb   :  { %3502 = vmatmul.mubr.bf16.vlgmr.msra.gmra.mrb[56].mxu1 %v2310_v55 }
0x15ec   :  { %3529 = vmatprep.mubr.msk.bf16.mxu1 %vm3867_vm5, %v3866_v3  ;;  %3514 = vmatpush3.bf16.msra.mxu1 %v3695_v11 }
0x15ed   :  { %3515 = vmatprep.subr.bf16.mxu1 %v3866_v3 }
0x15f0   :  { %3516 = vmatpush3.bf16.msra.mxu1 %v3696_v8 }
0x15f1   :  { %3517 = vmatprep.subr.bf16.mxu1 %v3866_v3 }
0x15f4   :  { %3518 = vmatpush3.bf16.msra.mxu1 %v3697_v17 }
0x15f5   :  { %3519 = vmatprep.subr.bf16.mxu1 %v3866_v3 }
0x15f8   :  { %3520 = vmatpush3.bf16.msra.mxu1 %v3698_v12 }
0x15f9   :  { %3521 = vmatprep.subr.bf16.mxu1 %v3866_v3 }
0x15fc   :  { %3522 = vmatpush3.bf16.msra.mxu1 %v3699_v13 }
0x15fd   :  { %3523 = vmatprep.subr.bf16.mxu1 %v3866_v3 }
0x1600   :  { %3524 = vmatpush3.bf16.msra.mxu1 %v3700_v14 }
0x1601   :  { %3525 = vmatprep.subr.bf16.mxu1 %v3866_v3 }
0x1604   :  { %3526 = vmatpush3.bf16.msra.mxu1 %v3701_v18 }
0x1605   :  { %3527 = vmatprep.subr.bf16.mxu1 %v3866_v3 }
0x1608   :  { %3528 = vmatpush3.bf16.msra.mxu1 %v3702_v19 }
0x1609   :  { %3553 = vmatprep.subr.bf16.mxu1 %v3866_v3 }
0x16be   :  { %v3503_v58 = vpop.f32.mrb[56].mxu1 }
0x16bf   :  { %v2427_v59 = vadd.f32 %v3503_v58, %v2933_v57  ;;  %v2418_v60 = vpop.f32.mrb[57].mxu1  ;;  %v2722_v58 = vld [vmem:[%s4326_s5] sm:$0x1] }
0x16c0   :  { %v2419_v5 = vadd.f32 %v2933_v57, %v2418_v60  ;;  %v3504_v63 = vpop.f32.mrb[58].mxu1 }
0x16c1   :  { %v2430_v0 = vadd.f32 %v3504_v63, %v2933_v57  ;;  %v2421_v1 = vpop.f32.mrb[59].mxu1  ;;  %v2435_v15 = vmax.f32 %v2427_v59, 0.0 }
0x16c2   :  { %v2422_v7 = vadd.f32 %v2933_v57, %v2421_v1  ;;  %v2433_v4 = vmax.f32 %v2419_v5, 0.0 }
0x16c3   :  { %v2436_v2 = vmax.f32 %v2430_v0, 0.0 }
0x16c4   :  { %v2434_v6 = vmax.f32 %v2422_v7, 0.0 }
0x16c5   :  { %v2438_v16 = vpack.c.bf16 %v2436_v2, %v2435_v15 }
0x16c6   :  { %v2437_v10 = vpack.c.bf16 %v2434_v6, %v2433_v4 }
0x16c8   :  { %3506 = vmatpush3.bf16.msra.mxu0 %v2437_v10 }
0x16c9   :  { %3507 = vmatprep.subr.bf16.mxu0 %v3866_v3 }
0x16cc   :  { %3508 = vmatpush3.bf16.msra.mxu0 %v2438_v16 }
0x16cd   :  { %3533 = vmatprep.subr.bf16.mxu0 %v3866_v3 }
0x16cf   :  { %3510 = vmatmul.mubr.msk.bf16.vlgmr.msra.gmra.mrb[44].mxu0 %vm591_vm6, %v3715_v9 }
0x16d0   :  { %3549 = vmatprep.mubr.msk.bf16.mxu0 %vm3867_vm5, %v3866_v3  ;;  %3534 = vmatpush3.bf16.msra.mxu0 %v3703_v20 }
0x16d1   :  { %3535 = vmatprep.subr.bf16.mxu0 %v3866_v3 }
0x16d4   :  { %3536 = vmatpush3.bf16.msra.mxu0 %v3704_v21 }
0x16d5   :  { %3537 = vmatprep.subr.bf16.mxu0 %v3866_v3 }
0x16d8   :  { %3538 = vmatpush3.bf16.msra.mxu0 %v3705_v22 }
0x16d9   :  { %3539 = vmatprep.subr.bf16.mxu0 %v3866_v3 }
0x16dc   :  { %3540 = vmatpush3.bf16.msra.mxu0 %v3706_v27 }
0x16dd   :  { %3541 = vmatprep.subr.bf16.mxu0 %v3866_v3 }
0x16e0   :  { %3542 = vmatpush3.bf16.msra.mxu0 %v3707_v28 }
0x16e1   :  { %3543 = vmatprep.subr.bf16.mxu0 %v3866_v3 }
0x16e4   :  { %3544 = vmatpush3.bf16.msra.mxu0 %v3708_v29 }
0x16e5   :  { %3545 = vmatprep.subr.bf16.mxu0 %v3866_v3 }
0x16e8   :  { %3546 = vmatpush3.bf16.msra.mxu0 %v3709_v35 }
0x16e9   :  { %3547 = vmatprep.subr.bf16.mxu0 %v3866_v3 }
0x16ec   :  { %3548 = vmatpush3.bf16.msra.mxu0 %v3710_v36 }
0x17a2   :  { %v2473_v25 = vpop.f32.mrb[44].mxu0 }
0x17a3   :  { %2480 = vrot.lane.b32.xlu0 %v2473_v25, %s3861_s30  ;;  %v3511_v23 = vpop.f32.mrb[45].mxu0 }
0x17a4   :  { %v2476_v24 = vpop.f32.mrb[46].mxu0 }
0x17a5   :  { %2482 = vrot.lane.b32.xlu1 %v2476_v24, %s3861_s30  ;;  %v3512_v26 = vpop.f32.mrb[47].mxu0 }
0x1815   :  { %v2481_v30 = vpop.permute.xlu0 %2480 }
0x1816   :  { %v2484_v32 = vadd.f32 %v2481_v30, %v4236_v61 }
0x1817   :  { %v2483_v31 = vpop.permute.xlu1 %2482 }
0x1818   :  { %v2485_v33 = vadd.f32 %v2483_v31, %v4239_v62 }
0x181a   :  { %v2486_v34 = vpack.c.bf16 %v2485_v33, %v2484_v32 }
0x181c   :  { %3530 = vmatmul.mubr.bf16.vlgmr.msra.gmra.mrb[60].mxu1 %v2486_v34 }
0x181d   :  { %3555 = vmatprep.mubr.msk.bf16.mxu1 %vm3867_vm5, %v3866_v3  ;;  %v2954_v3 = vld [vmem:[%s4334_s13 + $0x3] ss:$0 sm:$0xff]  ;;  %s3868_s13 = smov [#allocation11]  }
0x181e   :  { %s2774_s12 = sshll.u32 %s3868_s13, 4  ;;  %s2775_s12 = int_to_ptr.vmem [resolvable:$true] %s2774_s12 }
0x181f   :  { %s3826_s23 = scalar_lea.vmem %s2775_s12, 32  ;;  %p3831_p13 = scmp.lt.s32.totalorder %s2775_s12, %s2775_s12 }
0x1820   :  { %p3827_p12 = scmp.ne.s32.totalorder %s2775_s12, %s3826_s23  ;;  %p3832_p0 = scmp.lt.s32.totalorder %s3826_s23, %s3826_s23 }
0x1822   :  { %p3833_p1 = por %p3832_p0, %p3831_p13 }
0x1824   :  { %p3834_p2 = pnand %p3833_p1, %p3827_p12 }
0x18ef   :  { %v2594_v38 = vpop.f32.mrb[60].mxu1 }
0x18f0   :  { %v2595_v39 = vadd.f32 %v2944_v37, %v2594_v38  ;;  %v3531_v40 = vpop.f32.mrb[61].mxu1 }
0x18f1   :  { %v2597_v41 = vpop.f32.mrb[62].mxu1 }
0x18f2   :  { %v2598_v42 = vadd.f32 %v2944_v37, %v2597_v41  ;;  %v3532_v43 = vpop.f32.mrb[63].mxu1  ;;  %v2601_v44 = vmax.f32 %v2595_v39, 0.0 }
0x18f4   :  { %v2602_v45 = vmax.f32 %v2598_v42, 0.0 }
0x18f6   :  { %v2603_v46 = vpack.c.bf16 %v2602_v45, %v2601_v44 }
0x18f8   :  { %3550 = vmatmul.mubr.bf16.vlgmr.msra.gmra.mrb[48].mxu0 %v2603_v46 }
0x19cb   :  { %v2711_v47 = vpop.f32.mrb[48].mxu0 }
0x19cc   :  { %v2712_v48 = vadd.f32 %v2954_v3, %v2711_v47  ;;  %v3551_v49 = vpop.f32.mrb[49].mxu0 }
0x19cd   :  { %v2714_v50 = vpop.f32.mrb[50].mxu0 }
0x19ce   :  { %v2718_v51 = vmax.f32 %v2712_v48, 0.0  ;;  %v2715_v52 = vadd.f32 %v2954_v3, %v2714_v50  ;;  %v3552_v53 = vpop.f32.mrb[51].mxu0 }
0x19d0   :  { %v2719_v54 = vmax.f32 %v2715_v52, 0.0  ;;  %v2720_v55 = vadd.f32 %v2718_v51, %v4236_v61 }
0x19d2   :  { %v2721_v56 = vadd.f32 %v2719_v54, %v4239_v62 }
0x19d4   :  { %v2723_v57 = vpack.c.bf16 %v2721_v56, %v2720_v55 }
0x19d6   :  { %3554 = vmatpush3.bf16.msra.mxu1 %v2723_v57 }
0x19d9   :  { %3556 = vmatmul.mubr.msk.bf16.vlgmr.msra.gmra.mrb[64].mxu1 %vm245_vm4, %v2722_v58 }
0x1aac   :  { %v2761_v59 = vpop.f32.mrb[64].mxu1 }
0x1aad   :  { %2767 = vst [vmem:[#allocation11] sm:$0x3] %v2761_v59  ;;  %v3557_v60 = vpop.f32.mrb[65].mxu1 }
0x1aae   :  { %v2764_v5 = vpop.f32.mrb[66].mxu1 }
0x1aaf   :  { %3837 = shalt.err (!%p3834_p2)
}
0x1ab0   :  { %s3838_s5 = scalar_lea.hbm %s4335_s14, 32 }
0x1ab1   :  { %p3839_p3 = scmp.ne.s32.totalorder %s4335_s14, %s3838_s5  ;;  %p3842_p4 = scmp.lt.u32.totalorder %s3838_s5, %s4335_s14 }
0x1ab3   :  { %p3844_p5 = pnand %p3842_p4, %p3839_p3 }
0x1ab5   :  { %3847 = shalt.err (!%p3844_p5)
}
0x1ab6   :  { %2777 = dma.vmem_to_hbm [thread:$0]  %s2775_s12, 32, %s4335_s14, [#allocation4]   ;;  %v3558_v61 = vpop.f32.mrb[67].mxu1 }
0x1ab7   :  { %3854 = dma.done.wait [#allocation4], 32  }
0x1ab8   :  { %3855 = vsyncadd [#allocation4], 4294967264 }
0x1ab9   :  { %2781 = vsyncpa [#allocation3], 1 }
0x1aba   :  { %2782 = vsyncpa [#allocation6], 1 }
0x1abb   :  { %2783 = vsyncpa [#allocation9], 1 }
0x1abc   :  { %2784 = vsyncpa [#allocation4], 1 }

</bundles_post_ra>
